<compile_context>
chip_gen: v5e
topology: v5e:2x2
jax: 0.10.0
libtpu: 0.0.40
codegen_flags: <defaults>
</compile_context>

<pallas_src>
import math
import jax
import jax.numpy as jnp
from jax.experimental import pallas as pl
from jax.experimental.pallas import tpu as pltpu  # noqa: F401  (kept for scratch/params if scaled up)

# ----- model hyper-parameters (small, consistent with the nn.Module) -----
LSTM_SIZE = 32          # hidden size H (== embedding_dim, as the module requires)
EMBED_DIM = 32
NUM_LAYERS = 2
VOCAB = 64
VOCAB_PAD = 128         # lane-dense padded vocab (unmasked 128-lane stores)
BATCH = 4
BATCH_PAD = 8           # pad batch to one 8-sublane tile
SEQ = 8
DROPOUT = 0.0           # TODO(synk): inter-layer dropout is train-mode-only; eval semantics here.


# ---------------- Fused Pallas kernel ----------------

def _make_fused_kernel(num_layers, T, Bp, H):
    """Embedding-projected inputs -> L LSTM layers (wavefront) -> FC logits.

    Ref order: lens, x2d, (w_ih, w_hh, b) * L, w_fc, b_fc,
               logits, h_out, c_out          (no scratch; everything in-register)
    """
    def kernel(*refs):
        it = iter(refs)
        lens_ref = next(it)          # (Bp, 1) int32 (pad rows have length 0)
        x_ref = next(it)             # (T*Bp, H) f32, time-major rows (t*Bp + b)
        layers = [(next(it), next(it), next(it)) for _ in range(num_layers)]
        wfc_ref = next(it)           # (H, VOCAB_PAD)
        bfc_ref = next(it)           # (1, VOCAB_PAD)
        logits_ref = next(it)        # (T*Bp, VOCAB_PAD)  output
        h_out_ref = next(it)         # (L, Bp, H)          output
        c_out_ref = next(it)         # (L, Bp, H)          output

        # Read lengths once; per-step packed-sequence masks hoisted off the chain.
        lens_v = lens_ref[...]                         # (Bp, 1)
        valids = [lens_v > t for t in range(T)]

        # Hoisted layer-0 input projection: one (T*Bp, H) @ (H, 4H) MXU matmul,
        # kept as an in-register (64, 128) value (8 vregs).
        wih0, _, b0 = layers[0]
        xp0 = (jnp.dot(x_ref[...], wih0[...], preferred_element_type=jnp.float32)
               + b0[...])

        # Keep weights vreg-resident across the whole recurrence.
        whh = [layers[l][1][...] for l in range(num_layers)]
        wih_u = [None] + [layers[l][0][...] for l in range(1, num_layers)]
        b_u = [None] + [layers[l][2][...] for l in range(1, num_layers)]
        wfc = wfc_ref[...]
        bfc = bfc_ref[...]

        h = [jnp.zeros((Bp, H), jnp.float32) for _ in range(num_layers)]
        c = [jnp.zeros((Bp, H), jnp.float32) for _ in range(num_layers)]
        y_prev = [None] * num_layers   # most recent output of each layer

        def cell(xproj, h_l, c_l, whh_l, valid):
            # gates is exactly one (8,128) f32 vreg: i | f | g | o columns.
            gates = xproj + jnp.dot(h_l, whh_l, preferred_element_type=jnp.float32)
            sig = jax.nn.sigmoid(gates)      # 1 EUP pass over the whole vreg
            th = jnp.tanh(gates)             # 1 EUP pass over the whole vreg
            i_g = sig[:, 0 * H:1 * H]
            f_g = sig[:, 1 * H:2 * H]
            g_g = th[:, 2 * H:3 * H]
            o_g = sig[:, 3 * H:4 * H]
            c_new = f_g * c_l + i_g * g_g
            h_new = o_g * jnp.tanh(c_new)    # 3rd (and last) EUP pass
            h_n = jnp.where(valid, h_new, h_l)   # freeze state past seq end
            c_n = jnp.where(valid, c_new, c_l)
            y = jnp.where(valid, h_new, 0.0)     # pad_packed_sequence zero-fill
            return h_n, c_n, y

        # Wavefront over (layer, time): step s runs layer l at time t = s - l, so
        # the serial critical path is T + L - 1 cell latencies instead of T * L,
        # and the upper layer's MXU/EUP work fills the lower layer's stalls.
        for s in range(T + num_layers - 1):
            snap = list(y_prev)              # previous-step outputs (read-before-write)
            for l in range(num_layers):
                t = s - l
                if not (0 <= t < T):
                    continue
                if l == 0:
                    xproj = xp0[t * Bp:(t + 1) * Bp, :]        # aligned 8-row vreg pick
                else:
                    # Upper-layer input projection fed by the layer below's
                    # just-produced output (off this layer's h-chain).
                    xproj = (jnp.dot(snap[l - 1], wih_u[l],
                                     preferred_element_type=jnp.float32) + b_u[l])
                h[l], c[l], y = cell(xproj, h[l], c[l], whh[l], valids[t])
                y_prev[l] = y
                if l == num_layers - 1:
                    # Fused FC: (Bp,H)@(H,128) and a full, unmasked, 8-sublane /
                    # 128-lane aligned store of this timestep's logits.
                    logits_ref[t * Bp:(t + 1) * Bp, :] = (
                        jnp.dot(y, wfc, preferred_element_type=jnp.float32) + bfc)

        for l in range(num_layers):
            h_out_ref[l] = h[l]
            c_out_ref[l] = c[l]
    return kernel


def lstm_lm_fused(lens_p, x2d, layer_w, wfc_p, bfc_p, *, T, Bp, H, L):
    """lens_p: (Bp,1) i32; x2d: (T*Bp, H) f32 time-major; layer_w: [(w_ih, w_hh, b)]*L.
    Returns (logits_padded (T*Bp, VOCAB_PAD), h (L,Bp,H), c (L,Bp,H))."""
    flat_w = []
    for wih, whh, b in layer_w:
        flat_w += [wih, whh, b]
    return pl.pallas_call(
        _make_fused_kernel(L, T, Bp, H),
        out_shape=(
            jax.ShapeDtypeStruct((T * Bp, VOCAB_PAD), jnp.float32),
            jax.ShapeDtypeStruct((L, Bp, H), jnp.float32),
            jax.ShapeDtypeStruct((L, Bp, H), jnp.float32),
        ),
    )(lens_p, x2d, *flat_w, wfc_p, bfc_p)


# ---------------- Model wrapper (glue in plain JAX, jitted) ----------------

def init_params(key):
    r = 1.0 / math.sqrt(LSTM_SIZE)
    keys = jax.random.split(key, 3 + 4 * NUM_LAYERS)
    w_fc = jax.random.uniform(keys[1], (LSTM_SIZE, VOCAB),
                              minval=-r, maxval=r, dtype=jnp.float32)
    b_fc = jnp.zeros((1, VOCAB), jnp.float32)
    params = {
        "emb": jax.random.uniform(keys[0], (VOCAB, EMBED_DIM),
                                  minval=-0.1, maxval=0.1, dtype=jnp.float32),
        "w_fc": w_fc, "b_fc": b_fc,
        # Lane-dense padded FC weights precomputed ONCE here (not per call).
        "w_fc_pad": jnp.zeros((LSTM_SIZE, VOCAB_PAD), jnp.float32).at[:, :VOCAB].set(w_fc),
        "b_fc_pad": jnp.zeros((1, VOCAB_PAD), jnp.float32).at[:, :VOCAB].set(b_fc),
        "w_ih": [], "w_hh": [], "b": [],
    }
    k = 2
    for l in range(NUM_LAYERS):
        in_dim = EMBED_DIM if l == 0 else LSTM_SIZE
        w_ih = jax.random.uniform(keys[k], (in_dim, 4 * LSTM_SIZE),
                                  minval=-r, maxval=r, dtype=jnp.float32); k += 1
        w_hh = jax.random.uniform(keys[k], (LSTM_SIZE, 4 * LSTM_SIZE),
                                  minval=-r, maxval=r, dtype=jnp.float32); k += 1
        b_ih = jax.random.uniform(keys[k], (4 * LSTM_SIZE,),
                                  minval=-r, maxval=r, dtype=jnp.float32); k += 1
        b_hh = jax.random.uniform(keys[k], (4 * LSTM_SIZE,),
                                  minval=-r, maxval=r, dtype=jnp.float32); k += 1
        params["w_ih"].append(w_ih)
        params["w_hh"].append(w_hh)
        params["b"].append((b_ih + b_hh).reshape(1, 4 * LSTM_SIZE))
    return params


@jax.jit
def forward(params, x_tokens, x_lens):
    """x_tokens: (B, T) int32, x_lens: (B,) int32.
    Returns (logits (B, T, V) for the FULL padded length T, (h (L,B,H), c (L,B,H))).
    pad_packed_sequence's data-dependent T_max slice is left to the caller
    (host-side) so the jitted hot path has no device sync."""
    B, T = x_tokens.shape
    Bp = BATCH_PAD
    # Embedding lookup: gather glue in plain JAX (no dense hot-path to fuse).
    emb = jnp.take(params["emb"], x_tokens, axis=0).astype(jnp.float32)   # (B, T, E)
    x_tm = jnp.transpose(emb, (1, 0, 2))                                  # (T, B, E)
    x_tm = jnp.pad(x_tm, ((0, 0), (0, Bp - B), (0, 0)))                   # (T, Bp, E)
    x2d = x_tm.reshape(T * Bp, EMBED_DIM)
    lens_p = jnp.pad(x_lens.astype(jnp.int32), (0, Bp - B)).reshape(Bp, 1)

    layer_w = list(zip(params["w_ih"], params["w_hh"], params["b"]))
    logits_p, h, c = lstm_lm_fused(lens_p, x2d, layer_w,
                                   params["w_fc_pad"], params["b_fc_pad"],
                                   T=T, Bp=Bp, H=LSTM_SIZE, L=NUM_LAYERS)

    logits = logits_p.reshape(T, Bp, VOCAB_PAD)[:, :B, :VOCAB].transpose(1, 0, 2)
    return logits, (h[:, :B, :], c[:, :B, :])


# ---------------- Pure-JAX reference (for verification) ----------------

def ref_forward(params, x_tokens, x_lens):
    emb = jnp.take(params["emb"], x_tokens, axis=0)
    B, T, _ = emb.shape
    H = LSTM_SIZE
    layer_in = emb.astype(jnp.float32)
    hs, cs = [], []
    for l in range(NUM_LAYERS):
        w_ih, w_hh, b = params["w_ih"][l], params["w_hh"][l], params["b"][l]

        def step(carry, xt_t):
            h, c = carry
            xt, t = xt_t
            gates = xt @ w_ih + h @ w_hh + b
            i = jax.nn.sigmoid(gates[:, :H])
            f = jax.nn.sigmoid(gates[:, H:2 * H])
            g = jnp.tanh(gates[:, 2 * H:3 * H])
            o = jax.nn.sigmoid(gates[:, 3 * H:])
            c_new = f * c + i * g
            h_new = o * jnp.tanh(c_new)
            valid = (x_lens > t)[:, None]
            h2 = jnp.where(valid, h_new, h)
            c2 = jnp.where(valid, c_new, c)
            y = jnp.where(valid, h_new, 0.0)
            return (h2, c2), y

        (h, c), ys = jax.lax.scan(
            step,
            (jnp.zeros((B, H), jnp.float32), jnp.zeros((B, H), jnp.float32)),
            (jnp.transpose(layer_in, (1, 0, 2)), jnp.arange(T)))
        hs.append(h)
        cs.append(c)
        layer_in = jnp.transpose(ys, (1, 0, 2))
    t_max = int(jnp.max(x_lens))
    out = layer_in[:, :t_max]
    logits = out @ params["w_fc"] + params["b_fc"]
    return logits, (jnp.stack(hs), jnp.stack(cs))


if __name__ == "__main__":
    key = jax.random.PRNGKey(0)
    k_param, k_tok = jax.random.split(key)
    params = init_params(k_param)

    x = jax.random.randint(k_tok, (BATCH, SEQ), 0, VOCAB, dtype=jnp.int32)
    x_lens = jnp.array([7, 5, 6, 3], dtype=jnp.int32)   # max < SEQ exercises padding

    logits_full, (h, c) = forward(params, x, x_lens)
    jax.block_until_ready((logits_full, h, c))

    # pad_packed_sequence pads to max(x_lens): data-dependent slice done host-side.
    t_max = int(jnp.max(x_lens))
    logits = logits_full[:, :t_max, :]

    ref_logits, (ref_h, ref_c) = ref_forward(params, x, x_lens)
    assert logits_full.shape == (BATCH, SEQ, VOCAB)
    assert logits.shape == (BATCH, t_max, VOCAB)
    assert h.shape == (NUM_LAYERS, BATCH, LSTM_SIZE)
    assert c.shape == (NUM_LAYERS, BATCH, LSTM_SIZE)
    assert jnp.allclose(logits, ref_logits, atol=1e-4, rtol=1e-4)
    assert jnp.allclose(h, ref_h, atol=1e-4, rtol=1e-4)
    assert jnp.allclose(c, ref_c, atol=1e-4, rtol=1e-4)

    print("KERNEL_OK")
</pallas_src>

<mosaic_0001>
module attributes {stable_mosaic.version = 11 : i64} {
  func.func @kernel(%arg0: memref<8x1xi32, #tpu.memory_space<vmem>>, %arg1: memref<64x32xf32, #tpu.memory_space<vmem>>, %arg2: memref<32x128xf32, #tpu.memory_space<vmem>>, %arg3: memref<32x128xf32, #tpu.memory_space<vmem>>, %arg4: memref<1x128xf32, #tpu.memory_space<vmem>>, %arg5: memref<32x128xf32, #tpu.memory_space<vmem>>, %arg6: memref<32x128xf32, #tpu.memory_space<vmem>>, %arg7: memref<1x128xf32, #tpu.memory_space<vmem>>, %arg8: memref<32x128xf32, #tpu.memory_space<vmem>>, %arg9: memref<1x128xf32, #tpu.memory_space<vmem>>, %arg10: memref<64x128xf32, #tpu.memory_space<vmem>>, %arg11: memref<2x8x32xf32, #tpu.memory_space<vmem>>, %arg12: memref<2x8x32xf32, #tpu.memory_space<vmem>>) attributes {dimension_semantics = [], scalar_prefetch = 0 : i64, scratch_operands = 0 : i64, tpu.core_type = #tpu.core_type<tc>} {
    %c0 = arith.constant 0 : index
    %c0_0 = arith.constant 0 : index
    %0 = vector.load %arg0[%c0, %c0_0] : memref<8x1xi32, #tpu.memory_space<vmem>>, vector<8x1xi32>
    %c0_i32 = arith.constant 0 : i32
    %1 = vector.broadcast %c0_i32 : i32 to vector<8x1xi32>
    %2 = arith.cmpi sgt, %0, %1 : vector<8x1xi32>
    %c1_i32 = arith.constant 1 : i32
    %3 = vector.broadcast %c1_i32 : i32 to vector<8x1xi32>
    %4 = arith.cmpi sgt, %0, %3 : vector<8x1xi32>
    %c2_i32 = arith.constant 2 : i32
    %5 = vector.broadcast %c2_i32 : i32 to vector<8x1xi32>
    %6 = arith.cmpi sgt, %0, %5 : vector<8x1xi32>
    %c3_i32 = arith.constant 3 : i32
    %7 = vector.broadcast %c3_i32 : i32 to vector<8x1xi32>
    %8 = arith.cmpi sgt, %0, %7 : vector<8x1xi32>
    %c4_i32 = arith.constant 4 : i32
    %9 = vector.broadcast %c4_i32 : i32 to vector<8x1xi32>
    %10 = arith.cmpi sgt, %0, %9 : vector<8x1xi32>
    %c5_i32 = arith.constant 5 : i32
    %11 = vector.broadcast %c5_i32 : i32 to vector<8x1xi32>
    %12 = arith.cmpi sgt, %0, %11 : vector<8x1xi32>
    %c6_i32 = arith.constant 6 : i32
    %13 = vector.broadcast %c6_i32 : i32 to vector<8x1xi32>
    %14 = arith.cmpi sgt, %0, %13 : vector<8x1xi32>
    %c7_i32 = arith.constant 7 : i32
    %15 = vector.broadcast %c7_i32 : i32 to vector<8x1xi32>
    %16 = arith.cmpi sgt, %0, %15 : vector<8x1xi32>
    %c0_1 = arith.constant 0 : index
    %c0_2 = arith.constant 0 : index
    %17 = vector.load %arg1[%c0_1, %c0_2] : memref<64x32xf32, #tpu.memory_space<vmem>>, vector<64x32xf32>
    %c0_3 = arith.constant 0 : index
    %c0_4 = arith.constant 0 : index
    %18 = vector.load %arg2[%c0_3, %c0_4] : memref<32x128xf32, #tpu.memory_space<vmem>>, vector<32x128xf32>
    %cst = arith.constant dense<0.000000e+00> : vector<64x128xf32>
    %19 = tpu.matmul %17, %18, %cst {dimension_numbers = #tpu.dot_dimension_numbers<[1], [0], [0], [1], [0, 0, 1, 1], [], []>} : vector<64x32xf32>, vector<32x128xf32>, vector<64x128xf32> -> vector<64x128xf32>
    %c0_5 = arith.constant 0 : index
    %c0_6 = arith.constant 0 : index
    %20 = vector.load %arg4[%c0_5, %c0_6] : memref<1x128xf32, #tpu.memory_space<vmem>>, vector<1x128xf32>
    %21 = vector.broadcast %20 : vector<1x128xf32> to vector<64x128xf32>
    %22 = arith.addf %19, %21 : vector<64x128xf32>
    %c0_7 = arith.constant 0 : index
    %c0_8 = arith.constant 0 : index
    %23 = vector.load %arg3[%c0_7, %c0_8] : memref<32x128xf32, #tpu.memory_space<vmem>>, vector<32x128xf32>
    %c0_9 = arith.constant 0 : index
    %c0_10 = arith.constant 0 : index
    %24 = vector.load %arg6[%c0_9, %c0_10] : memref<32x128xf32, #tpu.memory_space<vmem>>, vector<32x128xf32>
    %c0_11 = arith.constant 0 : index
    %c0_12 = arith.constant 0 : index
    %25 = vector.load %arg5[%c0_11, %c0_12] : memref<32x128xf32, #tpu.memory_space<vmem>>, vector<32x128xf32>
    %c0_13 = arith.constant 0 : index
    %c0_14 = arith.constant 0 : index
    %26 = vector.load %arg7[%c0_13, %c0_14] : memref<1x128xf32, #tpu.memory_space<vmem>>, vector<1x128xf32>
    %c0_15 = arith.constant 0 : index
    %c0_16 = arith.constant 0 : index
    %27 = vector.load %arg8[%c0_15, %c0_16] : memref<32x128xf32, #tpu.memory_space<vmem>>, vector<32x128xf32>
    %c0_17 = arith.constant 0 : index
    %c0_18 = arith.constant 0 : index
    %28 = vector.load %arg9[%c0_17, %c0_18] : memref<1x128xf32, #tpu.memory_space<vmem>>, vector<1x128xf32>
    %cst_19 = arith.constant 0.000000e+00 : f32
    %29 = vector.broadcast %cst_19 : f32 to vector<8x32xf32>
    %cst_20 = arith.constant 0.000000e+00 : f32
    %30 = vector.broadcast %cst_20 : f32 to vector<8x32xf32>
    %cst_21 = arith.constant 0.000000e+00 : f32
    %31 = vector.broadcast %cst_21 : f32 to vector<8x32xf32>
    %cst_22 = arith.constant 0.000000e+00 : f32
    %32 = vector.broadcast %cst_22 : f32 to vector<8x32xf32>
    %33 = vector.extract_strided_slice %22 {offsets = [0, 0], sizes = [8, 128], strides = [1, 1]} : vector<64x128xf32> to vector<8x128xf32>
    %cst_23 = arith.constant dense<0.000000e+00> : vector<8x128xf32>
    %34 = tpu.matmul %29, %23, %cst_23 {dimension_numbers = #tpu.dot_dimension_numbers<[1], [0], [0], [1], [0, 0, 1, 1], [], []>} : vector<8x32xf32>, vector<32x128xf32>, vector<8x128xf32> -> vector<8x128xf32>
    %35 = arith.addf %33, %34 : vector<8x128xf32>
    %36 = arith.negf %35 : vector<8x128xf32>
    %37 = math.exp %36 : vector<8x128xf32>
    %cst_24 = arith.constant 1.000000e+00 : f32
    %38 = vector.broadcast %cst_24 : f32 to vector<8x128xf32>
    %39 = arith.addf %38, %37 : vector<8x128xf32>
    %40 = arith.divf %38, %39 : vector<8x128xf32>
    %41 = math.tanh %35 : vector<8x128xf32>
    %42 = vector.extract_strided_slice %40 {offsets = [0, 0], sizes = [8, 32], strides = [1, 1]} : vector<8x128xf32> to vector<8x32xf32>
    %43 = vector.extract_strided_slice %40 {offsets = [0, 32], sizes = [8, 32], strides = [1, 1]} : vector<8x128xf32> to vector<8x32xf32>
    %44 = vector.extract_strided_slice %41 {offsets = [0, 64], sizes = [8, 32], strides = [1, 1]} : vector<8x128xf32> to vector<8x32xf32>
    %45 = vector.extract_strided_slice %40 {offsets = [0, 96], sizes = [8, 32], strides = [1, 1]} : vector<8x128xf32> to vector<8x32xf32>
    %46 = arith.mulf %43, %31 : vector<8x32xf32>
    %47 = arith.mulf %42, %44 : vector<8x32xf32>
    %48 = arith.addf %46, %47 : vector<8x32xf32>
    %49 = math.tanh %48 : vector<8x32xf32>
    %50 = arith.mulf %45, %49 : vector<8x32xf32>
    %51 = vector.shape_cast %2 : vector<8x1xi1> to vector<8x1xi1>
    %52 = vector.broadcast %51 : vector<8x1xi1> to vector<8x32xi1>
    %53 = arith.select %52, %50, %29 : vector<8x32xi1>, vector<8x32xf32>
    %54 = vector.shape_cast %2 : vector<8x1xi1> to vector<8x1xi1>
    %55 = vector.broadcast %54 : vector<8x1xi1> to vector<8x32xi1>
    %56 = arith.select %55, %48, %31 : vector<8x32xi1>, vector<8x32xf32>
    %cst_25 = arith.constant 0.000000e+00 : f32
    %57 = vector.shape_cast %2 : vector<8x1xi1> to vector<8x1xi1>
    %58 = vector.broadcast %57 : vector<8x1xi1> to vector<8x32xi1>
    %59 = vector.broadcast %cst_25 : f32 to vector<8x32xf32>
    %60 = arith.select %58, %50, %59 : vector<8x32xi1>, vector<8x32xf32>
    %61 = vector.extract_strided_slice %22 {offsets = [8, 0], sizes = [8, 128], strides = [1, 1]} : vector<64x128xf32> to vector<8x128xf32>
    %cst_26 = arith.constant dense<0.000000e+00> : vector<8x128xf32>
    %62 = tpu.matmul %53, %23, %cst_26 {dimension_numbers = #tpu.dot_dimension_numbers<[1], [0], [0], [1], [0, 0, 1, 1], [], []>} : vector<8x32xf32>, vector<32x128xf32>, vector<8x128xf32> -> vector<8x128xf32>
    %63 = arith.addf %61, %62 : vector<8x128xf32>
    %64 = arith.negf %63 : vector<8x128xf32>
    %65 = math.exp %64 : vector<8x128xf32>
    %cst_27 = arith.constant 1.000000e+00 : f32
    %66 = vector.broadcast %cst_27 : f32 to vector<8x128xf32>
    %67 = arith.addf %66, %65 : vector<8x128xf32>
    %68 = arith.divf %66, %67 : vector<8x128xf32>
    %69 = math.tanh %63 : vector<8x128xf32>
    %70 = vector.extract_strided_slice %68 {offsets = [0, 0], sizes = [8, 32], strides = [1, 1]} : vector<8x128xf32> to vector<8x32xf32>
    %71 = vector.extract_strided_slice %68 {offsets = [0, 32], sizes = [8, 32], strides = [1, 1]} : vector<8x128xf32> to vector<8x32xf32>
    %72 = vector.extract_strided_slice %69 {offsets = [0, 64], sizes = [8, 32], strides = [1, 1]} : vector<8x128xf32> to vector<8x32xf32>
    %73 = vector.extract_strided_slice %68 {offsets = [0, 96], sizes = [8, 32], strides = [1, 1]} : vector<8x128xf32> to vector<8x32xf32>
    %74 = arith.mulf %71, %56 : vector<8x32xf32>
    %75 = arith.mulf %70, %72 : vector<8x32xf32>
    %76 = arith.addf %74, %75 : vector<8x32xf32>
    %77 = math.tanh %76 : vector<8x32xf32>
    %78 = arith.mulf %73, %77 : vector<8x32xf32>
    %79 = vector.shape_cast %4 : vector<8x1xi1> to vector<8x1xi1>
    %80 = vector.broadcast %79 : vector<8x1xi1> to vector<8x32xi1>
    %81 = arith.select %80, %78, %53 : vector<8x32xi1>, vector<8x32xf32>
    %82 = vector.shape_cast %4 : vector<8x1xi1> to vector<8x1xi1>
    %83 = vector.broadcast %82 : vector<8x1xi1> to vector<8x32xi1>
    %84 = arith.select %83, %76, %56 : vector<8x32xi1>, vector<8x32xf32>
    %cst_28 = arith.constant 0.000000e+00 : f32
    %85 = vector.shape_cast %4 : vector<8x1xi1> to vector<8x1xi1>
    %86 = vector.broadcast %85 : vector<8x1xi1> to vector<8x32xi1>
    %87 = vector.broadcast %cst_28 : f32 to vector<8x32xf32>
    %88 = arith.select %86, %78, %87 : vector<8x32xi1>, vector<8x32xf32>
    %cst_29 = arith.constant dense<0.000000e+00> : vector<8x128xf32>
    %89 = tpu.matmul %60, %25, %cst_29 {dimension_numbers = #tpu.dot_dimension_numbers<[1], [0], [0], [1], [0, 0, 1, 1], [], []>} : vector<8x32xf32>, vector<32x128xf32>, vector<8x128xf32> -> vector<8x128xf32>
    %90 = vector.broadcast %26 : vector<1x128xf32> to vector<8x128xf32>
    %91 = arith.addf %89, %90 : vector<8x128xf32>
    %cst_30 = arith.constant dense<0.000000e+00> : vector<8x128xf32>
    %92 = tpu.matmul %30, %24, %cst_30 {dimension_numbers = #tpu.dot_dimension_numbers<[1], [0], [0], [1], [0, 0, 1, 1], [], []>} : vector<8x32xf32>, vector<32x128xf32>, vector<8x128xf32> -> vector<8x128xf32>
    %93 = arith.addf %91, %92 : vector<8x128xf32>
    %94 = arith.negf %93 : vector<8x128xf32>
    %95 = math.exp %94 : vector<8x128xf32>
    %cst_31 = arith.constant 1.000000e+00 : f32
    %96 = vector.broadcast %cst_31 : f32 to vector<8x128xf32>
    %97 = arith.addf %96, %95 : vector<8x128xf32>
    %98 = arith.divf %96, %97 : vector<8x128xf32>
    %99 = math.tanh %93 : vector<8x128xf32>
    %100 = vector.extract_strided_slice %98 {offsets = [0, 0], sizes = [8, 32], strides = [1, 1]} : vector<8x128xf32> to vector<8x32xf32>
    %101 = vector.extract_strided_slice %98 {offsets = [0, 32], sizes = [8, 32], strides = [1, 1]} : vector<8x128xf32> to vector<8x32xf32>
    %102 = vector.extract_strided_slice %99 {offsets = [0, 64], sizes = [8, 32], strides = [1, 1]} : vector<8x128xf32> to vector<8x32xf32>
    %103 = vector.extract_strided_slice %98 {offsets = [0, 96], sizes = [8, 32], strides = [1, 1]} : vector<8x128xf32> to vector<8x32xf32>
    %104 = arith.mulf %101, %32 : vector<8x32xf32>
    %105 = arith.mulf %100, %102 : vector<8x32xf32>
    %106 = arith.addf %104, %105 : vector<8x32xf32>
    %107 = math.tanh %106 : vector<8x32xf32>
    %108 = arith.mulf %103, %107 : vector<8x32xf32>
    %109 = vector.shape_cast %2 : vector<8x1xi1> to vector<8x1xi1>
    %110 = vector.broadcast %109 : vector<8x1xi1> to vector<8x32xi1>
    %111 = arith.select %110, %108, %30 : vector<8x32xi1>, vector<8x32xf32>
    %112 = vector.shape_cast %2 : vector<8x1xi1> to vector<8x1xi1>
    %113 = vector.broadcast %112 : vector<8x1xi1> to vector<8x32xi1>
    %114 = arith.select %113, %106, %32 : vector<8x32xi1>, vector<8x32xf32>
    %cst_32 = arith.constant 0.000000e+00 : f32
    %115 = vector.shape_cast %2 : vector<8x1xi1> to vector<8x1xi1>
    %116 = vector.broadcast %115 : vector<8x1xi1> to vector<8x32xi1>
    %117 = vector.broadcast %cst_32 : f32 to vector<8x32xf32>
    %118 = arith.select %116, %108, %117 : vector<8x32xi1>, vector<8x32xf32>
    %cst_33 = arith.constant dense<0.000000e+00> : vector<8x128xf32>
    %119 = tpu.matmul %118, %27, %cst_33 {dimension_numbers = #tpu.dot_dimension_numbers<[1], [0], [0], [1], [0, 0, 1, 1], [], []>} : vector<8x32xf32>, vector<32x128xf32>, vector<8x128xf32> -> vector<8x128xf32>
    %120 = vector.broadcast %28 : vector<1x128xf32> to vector<8x128xf32>
    %121 = arith.addf %119, %120 : vector<8x128xf32>
    %c0_34 = arith.constant 0 : index
    %c0_35 = arith.constant 0 : index
    %122 = vector.load %arg10[%c0_34, %c0_35] : memref<64x128xf32, #tpu.memory_space<vmem>>, vector<8x128xf32>
    tpu.vector_store %arg10[%c0_34, %c0_35], %121 {strides = array<i32>} : memref<64x128xf32, #tpu.memory_space<vmem>>, vector<8x128xf32>,
    %123 = vector.extract_strided_slice %22 {offsets = [16, 0], sizes = [8, 128], strides = [1, 1]} : vector<64x128xf32> to vector<8x128xf32>
    %cst_36 = arith.constant dense<0.000000e+00> : vector<8x128xf32>
    %124 = tpu.matmul %81, %23, %cst_36 {dimension_numbers = #tpu.dot_dimension_numbers<[1], [0], [0], [1], [0, 0, 1, 1], [], []>} : vector<8x32xf32>, vector<32x128xf32>, vector<8x128xf32> -> vector<8x128xf32>
    %125 = arith.addf %123, %124 : vector<8x128xf32>
    %126 = arith.negf %125 : vector<8x128xf32>
    %127 = math.exp %126 : vector<8x128xf32>
    %cst_37 = arith.constant 1.000000e+00 : f32
    %128 = vector.broadcast %cst_37 : f32 to vector<8x128xf32>
    %129 = arith.addf %128, %127 : vector<8x128xf32>
    %130 = arith.divf %128, %129 : vector<8x128xf32>
    %131 = math.tanh %125 : vector<8x128xf32>
    %132 = vector.extract_strided_slice %130 {offsets = [0, 0], sizes = [8, 32], strides = [1, 1]} : vector<8x128xf32> to vector<8x32xf32>
    %133 = vector.extract_strided_slice %130 {offsets = [0, 32], sizes = [8, 32], strides = [1, 1]} : vector<8x128xf32> to vector<8x32xf32>
    %134 = vector.extract_strided_slice %131 {offsets = [0, 64], sizes = [8, 32], strides = [1, 1]} : vector<8x128xf32> to vector<8x32xf32>
    %135 = vector.extract_strided_slice %130 {offsets = [0, 96], sizes = [8, 32], strides = [1, 1]} : vector<8x128xf32> to vector<8x32xf32>
    %136 = arith.mulf %133, %84 : vector<8x32xf32>
    %137 = arith.mulf %132, %134 : vector<8x32xf32>
    %138 = arith.addf %136, %137 : vector<8x32xf32>
    %139 = math.tanh %138 : vector<8x32xf32>
    %140 = arith.mulf %135, %139 : vector<8x32xf32>
    %141 = vector.shape_cast %6 : vector<8x1xi1> to vector<8x1xi1>
    %142 = vector.broadcast %141 : vector<8x1xi1> to vector<8x32xi1>
    %143 = arith.select %142, %140, %81 : vector<8x32xi1>, vector<8x32xf32>
    %144 = vector.shape_cast %6 : vector<8x1xi1> to vector<8x1xi1>
    %145 = vector.broadcast %144 : vector<8x1xi1> to vector<8x32xi1>
    %146 = arith.select %145, %138, %84 : vector<8x32xi1>, vector<8x32xf32>
    %cst_38 = arith.constant 0.000000e+00 : f32
    %147 = vector.shape_cast %6 : vector<8x1xi1> to vector<8x1xi1>
    %148 = vector.broadcast %147 : vector<8x1xi1> to vector<8x32xi1>
    %149 = vector.broadcast %cst_38 : f32 to vector<8x32xf32>
    %150 = arith.select %148, %140, %149 : vector<8x32xi1>, vector<8x32xf32>
    %cst_39 = arith.constant dense<0.000000e+00> : vector<8x128xf32>
    %151 = tpu.matmul %88, %25, %cst_39 {dimension_numbers = #tpu.dot_dimension_numbers<[1], [0], [0], [1], [0, 0, 1, 1], [], []>} : vector<8x32xf32>, vector<32x128xf32>, vector<8x128xf32> -> vector<8x128xf32>
    %152 = vector.broadcast %26 : vector<1x128xf32> to vector<8x128xf32>
    %153 = arith.addf %151, %152 : vector<8x128xf32>
    %cst_40 = arith.constant dense<0.000000e+00> : vector<8x128xf32>
    %154 = tpu.matmul %111, %24, %cst_40 {dimension_numbers = #tpu.dot_dimension_numbers<[1], [0], [0], [1], [0, 0, 1, 1], [], []>} : vector<8x32xf32>, vector<32x128xf32>, vector<8x128xf32> -> vector<8x128xf32>
    %155 = arith.addf %153, %154 : vector<8x128xf32>
    %156 = arith.negf %155 : vector<8x128xf32>
    %157 = math.exp %156 : vector<8x128xf32>
    %cst_41 = arith.constant 1.000000e+00 : f32
    %158 = vector.broadcast %cst_41 : f32 to vector<8x128xf32>
    %159 = arith.addf %158, %157 : vector<8x128xf32>
    %160 = arith.divf %158, %159 : vector<8x128xf32>
    %161 = math.tanh %155 : vector<8x128xf32>
    %162 = vector.extract_strided_slice %160 {offsets = [0, 0], sizes = [8, 32], strides = [1, 1]} : vector<8x128xf32> to vector<8x32xf32>
    %163 = vector.extract_strided_slice %160 {offsets = [0, 32], sizes = [8, 32], strides = [1, 1]} : vector<8x128xf32> to vector<8x32xf32>
    %164 = vector.extract_strided_slice %161 {offsets = [0, 64], sizes = [8, 32], strides = [1, 1]} : vector<8x128xf32> to vector<8x32xf32>
    %165 = vector.extract_strided_slice %160 {offsets = [0, 96], sizes = [8, 32], strides = [1, 1]} : vector<8x128xf32> to vector<8x32xf32>
    %166 = arith.mulf %163, %114 : vector<8x32xf32>
    %167 = arith.mulf %162, %164 : vector<8x32xf32>
    %168 = arith.addf %166, %167 : vector<8x32xf32>
    %169 = math.tanh %168 : vector<8x32xf32>
    %170 = arith.mulf %165, %169 : vector<8x32xf32>
    %171 = vector.shape_cast %4 : vector<8x1xi1> to vector<8x1xi1>
    %172 = vector.broadcast %171 : vector<8x1xi1> to vector<8x32xi1>
    %173 = arith.select %172, %170, %111 : vector<8x32xi1>, vector<8x32xf32>
    %174 = vector.shape_cast %4 : vector<8x1xi1> to vector<8x1xi1>
    %175 = vector.broadcast %174 : vector<8x1xi1> to vector<8x32xi1>
    %176 = arith.select %175, %168, %114 : vector<8x32xi1>, vector<8x32xf32>
    %cst_42 = arith.constant 0.000000e+00 : f32
    %177 = vector.shape_cast %4 : vector<8x1xi1> to vector<8x1xi1>
    %178 = vector.broadcast %177 : vector<8x1xi1> to vector<8x32xi1>
    %179 = vector.broadcast %cst_42 : f32 to vector<8x32xf32>
    %180 = arith.select %178, %170, %179 : vector<8x32xi1>, vector<8x32xf32>
    %cst_43 = arith.constant dense<0.000000e+00> : vector<8x128xf32>
    %181 = tpu.matmul %180, %27, %cst_43 {dimension_numbers = #tpu.dot_dimension_numbers<[1], [0], [0], [1], [0, 0, 1, 1], [], []>} : vector<8x32xf32>, vector<32x128xf32>, vector<8x128xf32> -> vector<8x128xf32>
    %182 = vector.broadcast %28 : vector<1x128xf32> to vector<8x128xf32>
    %183 = arith.addf %181, %182 : vector<8x128xf32>
    %c8 = arith.constant 8 : index
    %c0_44 = arith.constant 0 : index
    %184 = vector.load %arg10[%c8, %c0_44] : memref<64x128xf32, #tpu.memory_space<vmem>>, vector<8x128xf32>
    tpu.vector_store %arg10[%c8, %c0_44], %183 {strides = array<i32>} : memref<64x128xf32, #tpu.memory_space<vmem>>, vector<8x128xf32>,
    %185 = vector.extract_strided_slice %22 {offsets = [24, 0], sizes = [8, 128], strides = [1, 1]} : vector<64x128xf32> to vector<8x128xf32>
    %cst_45 = arith.constant dense<0.000000e+00> : vector<8x128xf32>
    %186 = tpu.matmul %143, %23, %cst_45 {dimension_numbers = #tpu.dot_dimension_numbers<[1], [0], [0], [1], [0, 0, 1, 1], [], []>} : vector<8x32xf32>, vector<32x128xf32>, vector<8x128xf32> -> vector<8x128xf32>
    %187 = arith.addf %185, %186 : vector<8x128xf32>
    %188 = arith.negf %187 : vector<8x128xf32>
    %189 = math.exp %188 : vector<8x128xf32>
    %cst_46 = arith.constant 1.000000e+00 : f32
    %190 = vector.broadcast %cst_46 : f32 to vector<8x128xf32>
    %191 = arith.addf %190, %189 : vector<8x128xf32>
    %192 = arith.divf %190, %191 : vector<8x128xf32>
    %193 = math.tanh %187 : vector<8x128xf32>
    %194 = vector.extract_strided_slice %192 {offsets = [0, 0], sizes = [8, 32], strides = [1, 1]} : vector<8x128xf32> to vector<8x32xf32>
    %195 = vector.extract_strided_slice %192 {offsets = [0, 32], sizes = [8, 32], strides = [1, 1]} : vector<8x128xf32> to vector<8x32xf32>
    %196 = vector.extract_strided_slice %193 {offsets = [0, 64], sizes = [8, 32], strides = [1, 1]} : vector<8x128xf32> to vector<8x32xf32>
    %197 = vector.extract_strided_slice %192 {offsets = [0, 96], sizes = [8, 32], strides = [1, 1]} : vector<8x128xf32> to vector<8x32xf32>
    %198 = arith.mulf %195, %146 : vector<8x32xf32>
    %199 = arith.mulf %194, %196 : vector<8x32xf32>
    %200 = arith.addf %198, %199 : vector<8x32xf32>
    %201 = math.tanh %200 : vector<8x32xf32>
    %202 = arith.mulf %197, %201 : vector<8x32xf32>
    %203 = vector.shape_cast %8 : vector<8x1xi1> to vector<8x1xi1>
    %204 = vector.broadcast %203 : vector<8x1xi1> to vector<8x32xi1>
    %205 = arith.select %204, %202, %143 : vector<8x32xi1>, vector<8x32xf32>
    %206 = vector.shape_cast %8 : vector<8x1xi1> to vector<8x1xi1>
    %207 = vector.broadcast %206 : vector<8x1xi1> to vector<8x32xi1>
    %208 = arith.select %207, %200, %146 : vector<8x32xi1>, vector<8x32xf32>
    %cst_47 = arith.constant 0.000000e+00 : f32
    %209 = vector.shape_cast %8 : vector<8x1xi1> to vector<8x1xi1>
    %210 = vector.broadcast %209 : vector<8x1xi1> to vector<8x32xi1>
    %211 = vector.broadcast %cst_47 : f32 to vector<8x32xf32>
    %212 = arith.select %210, %202, %211 : vector<8x32xi1>, vector<8x32xf32>
    %cst_48 = arith.constant dense<0.000000e+00> : vector<8x128xf32>
    %213 = tpu.matmul %150, %25, %cst_48 {dimension_numbers = #tpu.dot_dimension_numbers<[1], [0], [0], [1], [0, 0, 1, 1], [], []>} : vector<8x32xf32>, vector<32x128xf32>, vector<8x128xf32> -> vector<8x128xf32>
    %214 = vector.broadcast %26 : vector<1x128xf32> to vector<8x128xf32>
    %215 = arith.addf %213, %214 : vector<8x128xf32>
    %cst_49 = arith.constant dense<0.000000e+00> : vector<8x128xf32>
    %216 = tpu.matmul %173, %24, %cst_49 {dimension_numbers = #tpu.dot_dimension_numbers<[1], [0], [0], [1], [0, 0, 1, 1], [], []>} : vector<8x32xf32>, vector<32x128xf32>, vector<8x128xf32> -> vector<8x128xf32>
    %217 = arith.addf %215, %216 : vector<8x128xf32>
    %218 = arith.negf %217 : vector<8x128xf32>
    %219 = math.exp %218 : vector<8x128xf32>
    %cst_50 = arith.constant 1.000000e+00 : f32
    %220 = vector.broadcast %cst_50 : f32 to vector<8x128xf32>
    %221 = arith.addf %220, %219 : vector<8x128xf32>
    %222 = arith.divf %220, %221 : vector<8x128xf32>
    %223 = math.tanh %217 : vector<8x128xf32>
    %224 = vector.extract_strided_slice %222 {offsets = [0, 0], sizes = [8, 32], strides = [1, 1]} : vector<8x128xf32> to vector<8x32xf32>
    %225 = vector.extract_strided_slice %222 {offsets = [0, 32], sizes = [8, 32], strides = [1, 1]} : vector<8x128xf32> to vector<8x32xf32>
    %226 = vector.extract_strided_slice %223 {offsets = [0, 64], sizes = [8, 32], strides = [1, 1]} : vector<8x128xf32> to vector<8x32xf32>
    %227 = vector.extract_strided_slice %222 {offsets = [0, 96], sizes = [8, 32], strides = [1, 1]} : vector<8x128xf32> to vector<8x32xf32>
    %228 = arith.mulf %225, %176 : vector<8x32xf32>
    %229 = arith.mulf %224, %226 : vector<8x32xf32>
    %230 = arith.addf %228, %229 : vector<8x32xf32>
    %231 = math.tanh %230 : vector<8x32xf32>
    %232 = arith.mulf %227, %231 : vector<8x32xf32>
    %233 = vector.shape_cast %6 : vector<8x1xi1> to vector<8x1xi1>
    %234 = vector.broadcast %233 : vector<8x1xi1> to vector<8x32xi1>
    %235 = arith.select %234, %232, %173 : vector<8x32xi1>, vector<8x32xf32>
    %236 = vector.shape_cast %6 : vector<8x1xi1> to vector<8x1xi1>
    %237 = vector.broadcast %236 : vector<8x1xi1> to vector<8x32xi1>
    %238 = arith.select %237, %230, %176 : vector<8x32xi1>, vector<8x32xf32>
    %cst_51 = arith.constant 0.000000e+00 : f32
    %239 = vector.shape_cast %6 : vector<8x1xi1> to vector<8x1xi1>
    %240 = vector.broadcast %239 : vector<8x1xi1> to vector<8x32xi1>
    %241 = vector.broadcast %cst_51 : f32 to vector<8x32xf32>
    %242 = arith.select %240, %232, %241 : vector<8x32xi1>, vector<8x32xf32>
    %cst_52 = arith.constant dense<0.000000e+00> : vector<8x128xf32>
    %243 = tpu.matmul %242, %27, %cst_52 {dimension_numbers = #tpu.dot_dimension_numbers<[1], [0], [0], [1], [0, 0, 1, 1], [], []>} : vector<8x32xf32>, vector<32x128xf32>, vector<8x128xf32> -> vector<8x128xf32>
    %244 = vector.broadcast %28 : vector<1x128xf32> to vector<8x128xf32>
    %245 = arith.addf %243, %244 : vector<8x128xf32>
    %c16 = arith.constant 16 : index
    %c0_53 = arith.constant 0 : index
    %246 = vector.load %arg10[%c16, %c0_53] : memref<64x128xf32, #tpu.memory_space<vmem>>, vector<8x128xf32>
    tpu.vector_store %arg10[%c16, %c0_53], %245 {strides = array<i32>} : memref<64x128xf32, #tpu.memory_space<vmem>>, vector<8x128xf32>,
    %247 = vector.extract_strided_slice %22 {offsets = [32, 0], sizes = [8, 128], strides = [1, 1]} : vector<64x128xf32> to vector<8x128xf32>
    %cst_54 = arith.constant dense<0.000000e+00> : vector<8x128xf32>
    %248 = tpu.matmul %205, %23, %cst_54 {dimension_numbers = #tpu.dot_dimension_numbers<[1], [0], [0], [1], [0, 0, 1, 1], [], []>} : vector<8x32xf32>, vector<32x128xf32>, vector<8x128xf32> -> vector<8x128xf32>
    %249 = arith.addf %247, %248 : vector<8x128xf32>
    %250 = arith.negf %249 : vector<8x128xf32>
    %251 = math.exp %250 : vector<8x128xf32>
    %cst_55 = arith.constant 1.000000e+00 : f32
    %252 = vector.broadcast %cst_55 : f32 to vector<8x128xf32>
    %253 = arith.addf %252, %251 : vector<8x128xf32>
    %254 = arith.divf %252, %253 : vector<8x128xf32>
    %255 = math.tanh %249 : vector<8x128xf32>
    %256 = vector.extract_strided_slice %254 {offsets = [0, 0], sizes = [8, 32], strides = [1, 1]} : vector<8x128xf32> to vector<8x32xf32>
    %257 = vector.extract_strided_slice %254 {offsets = [0, 32], sizes = [8, 32], strides = [1, 1]} : vector<8x128xf32> to vector<8x32xf32>
    %258 = vector.extract_strided_slice %255 {offsets = [0, 64], sizes = [8, 32], strides = [1, 1]} : vector<8x128xf32> to vector<8x32xf32>
    %259 = vector.extract_strided_slice %254 {offsets = [0, 96], sizes = [8, 32], strides = [1, 1]} : vector<8x128xf32> to vector<8x32xf32>
    %260 = arith.mulf %257, %208 : vector<8x32xf32>
    %261 = arith.mulf %256, %258 : vector<8x32xf32>
    %262 = arith.addf %260, %261 : vector<8x32xf32>
    %263 = math.tanh %262 : vector<8x32xf32>
    %264 = arith.mulf %259, %263 : vector<8x32xf32>
    %265 = vector.shape_cast %10 : vector<8x1xi1> to vector<8x1xi1>
    %266 = vector.broadcast %265 : vector<8x1xi1> to vector<8x32xi1>
    %267 = arith.select %266, %264, %205 : vector<8x32xi1>, vector<8x32xf32>
    %268 = vector.shape_cast %10 : vector<8x1xi1> to vector<8x1xi1>
    %269 = vector.broadcast %268 : vector<8x1xi1> to vector<8x32xi1>
    %270 = arith.select %269, %262, %208 : vector<8x32xi1>, vector<8x32xf32>
    %cst_56 = arith.constant 0.000000e+00 : f32
    %271 = vector.shape_cast %10 : vector<8x1xi1> to vector<8x1xi1>
    %272 = vector.broadcast %271 : vector<8x1xi1> to vector<8x32xi1>
    %273 = vector.broadcast %cst_56 : f32 to vector<8x32xf32>
    %274 = arith.select %272, %264, %273 : vector<8x32xi1>, vector<8x32xf32>
    %cst_57 = arith.constant dense<0.000000e+00> : vector<8x128xf32>
    %275 = tpu.matmul %212, %25, %cst_57 {dimension_numbers = #tpu.dot_dimension_numbers<[1], [0], [0], [1], [0, 0, 1, 1], [], []>} : vector<8x32xf32>, vector<32x128xf32>, vector<8x128xf32> -> vector<8x128xf32>
    %276 = vector.broadcast %26 : vector<1x128xf32> to vector<8x128xf32>
    %277 = arith.addf %275, %276 : vector<8x128xf32>
    %cst_58 = arith.constant dense<0.000000e+00> : vector<8x128xf32>
    %278 = tpu.matmul %235, %24, %cst_58 {dimension_numbers = #tpu.dot_dimension_numbers<[1], [0], [0], [1], [0, 0, 1, 1], [], []>} : vector<8x32xf32>, vector<32x128xf32>, vector<8x128xf32> -> vector<8x128xf32>
    %279 = arith.addf %277, %278 : vector<8x128xf32>
    %280 = arith.negf %279 : vector<8x128xf32>
    %281 = math.exp %280 : vector<8x128xf32>
    %cst_59 = arith.constant 1.000000e+00 : f32
    %282 = vector.broadcast %cst_59 : f32 to vector<8x128xf32>
    %283 = arith.addf %282, %281 : vector<8x128xf32>
    %284 = arith.divf %282, %283 : vector<8x128xf32>
    %285 = math.tanh %279 : vector<8x128xf32>
    %286 = vector.extract_strided_slice %284 {offsets = [0, 0], sizes = [8, 32], strides = [1, 1]} : vector<8x128xf32> to vector<8x32xf32>
    %287 = vector.extract_strided_slice %284 {offsets = [0, 32], sizes = [8, 32], strides = [1, 1]} : vector<8x128xf32> to vector<8x32xf32>
    %288 = vector.extract_strided_slice %285 {offsets = [0, 64], sizes = [8, 32], strides = [1, 1]} : vector<8x128xf32> to vector<8x32xf32>
    %289 = vector.extract_strided_slice %284 {offsets = [0, 96], sizes = [8, 32], strides = [1, 1]} : vector<8x128xf32> to vector<8x32xf32>
    %290 = arith.mulf %287, %238 : vector<8x32xf32>
    %291 = arith.mulf %286, %288 : vector<8x32xf32>
    %292 = arith.addf %290, %291 : vector<8x32xf32>
    %293 = math.tanh %292 : vector<8x32xf32>
    %294 = arith.mulf %289, %293 : vector<8x32xf32>
    %295 = vector.shape_cast %8 : vector<8x1xi1> to vector<8x1xi1>
    %296 = vector.broadcast %295 : vector<8x1xi1> to vector<8x32xi1>
    %297 = arith.select %296, %294, %235 : vector<8x32xi1>, vector<8x32xf32>
    %298 = vector.shape_cast %8 : vector<8x1xi1> to vector<8x1xi1>
    %299 = vector.broadcast %298 : vector<8x1xi1> to vector<8x32xi1>
    %300 = arith.select %299, %292, %238 : vector<8x32xi1>, vector<8x32xf32>
    %cst_60 = arith.constant 0.000000e+00 : f32
    %301 = vector.shape_cast %8 : vector<8x1xi1> to vector<8x1xi1>
    %302 = vector.broadcast %301 : vector<8x1xi1> to vector<8x32xi1>
    %303 = vector.broadcast %cst_60 : f32 to vector<8x32xf32>
    %304 = arith.select %302, %294, %303 : vector<8x32xi1>, vector<8x32xf32>
    %cst_61 = arith.constant dense<0.000000e+00> : vector<8x128xf32>
    %305 = tpu.matmul %304, %27, %cst_61 {dimension_numbers = #tpu.dot_dimension_numbers<[1], [0], [0], [1], [0, 0, 1, 1], [], []>} : vector<8x32xf32>, vector<32x128xf32>, vector<8x128xf32> -> vector<8x128xf32>
    %306 = vector.broadcast %28 : vector<1x128xf32> to vector<8x128xf32>
    %307 = arith.addf %305, %306 : vector<8x128xf32>
    %c24 = arith.constant 24 : index
    %c0_62 = arith.constant 0 : index
    %308 = vector.load %arg10[%c24, %c0_62] : memref<64x128xf32, #tpu.memory_space<vmem>>, vector<8x128xf32>
    tpu.vector_store %arg10[%c24, %c0_62], %307 {strides = array<i32>} : memref<64x128xf32, #tpu.memory_space<vmem>>, vector<8x128xf32>,
    %309 = vector.extract_strided_slice %22 {offsets = [40, 0], sizes = [8, 128], strides = [1, 1]} : vector<64x128xf32> to vector<8x128xf32>
    %cst_63 = arith.constant dense<0.000000e+00> : vector<8x128xf32>
    %310 = tpu.matmul %267, %23, %cst_63 {dimension_numbers = #tpu.dot_dimension_numbers<[1], [0], [0], [1], [0, 0, 1, 1], [], []>} : vector<8x32xf32>, vector<32x128xf32>, vector<8x128xf32> -> vector<8x128xf32>
    %311 = arith.addf %309, %310 : vector<8x128xf32>
    %312 = arith.negf %311 : vector<8x128xf32>
    %313 = math.exp %312 : vector<8x128xf32>
    %cst_64 = arith.constant 1.000000e+00 : f32
    %314 = vector.broadcast %cst_64 : f32 to vector<8x128xf32>
    %315 = arith.addf %314, %313 : vector<8x128xf32>
    %316 = arith.divf %314, %315 : vector<8x128xf32>
    %317 = math.tanh %311 : vector<8x128xf32>
    %318 = vector.extract_strided_slice %316 {offsets = [0, 0], sizes = [8, 32], strides = [1, 1]} : vector<8x128xf32> to vector<8x32xf32>
    %319 = vector.extract_strided_slice %316 {offsets = [0, 32], sizes = [8, 32], strides = [1, 1]} : vector<8x128xf32> to vector<8x32xf32>
    %320 = vector.extract_strided_slice %317 {offsets = [0, 64], sizes = [8, 32], strides = [1, 1]} : vector<8x128xf32> to vector<8x32xf32>
    %321 = vector.extract_strided_slice %316 {offsets = [0, 96], sizes = [8, 32], strides = [1, 1]} : vector<8x128xf32> to vector<8x32xf32>
    %322 = arith.mulf %319, %270 : vector<8x32xf32>
    %323 = arith.mulf %318, %320 : vector<8x32xf32>
    %324 = arith.addf %322, %323 : vector<8x32xf32>
    %325 = math.tanh %324 : vector<8x32xf32>
    %326 = arith.mulf %321, %325 : vector<8x32xf32>
    %327 = vector.shape_cast %12 : vector<8x1xi1> to vector<8x1xi1>
    %328 = vector.broadcast %327 : vector<8x1xi1> to vector<8x32xi1>
    %329 = arith.select %328, %326, %267 : vector<8x32xi1>, vector<8x32xf32>
    %330 = vector.shape_cast %12 : vector<8x1xi1> to vector<8x1xi1>
    %331 = vector.broadcast %330 : vector<8x1xi1> to vector<8x32xi1>
    %332 = arith.select %331, %324, %270 : vector<8x32xi1>, vector<8x32xf32>
    %cst_65 = arith.constant 0.000000e+00 : f32
    %333 = vector.shape_cast %12 : vector<8x1xi1> to vector<8x1xi1>
    %334 = vector.broadcast %333 : vector<8x1xi1> to vector<8x32xi1>
    %335 = vector.broadcast %cst_65 : f32 to vector<8x32xf32>
    %336 = arith.select %334, %326, %335 : vector<8x32xi1>, vector<8x32xf32>
    %cst_66 = arith.constant dense<0.000000e+00> : vector<8x128xf32>
    %337 = tpu.matmul %274, %25, %cst_66 {dimension_numbers = #tpu.dot_dimension_numbers<[1], [0], [0], [1], [0, 0, 1, 1], [], []>} : vector<8x32xf32>, vector<32x128xf32>, vector<8x128xf32> -> vector<8x128xf32>
    %338 = vector.broadcast %26 : vector<1x128xf32> to vector<8x128xf32>
    %339 = arith.addf %337, %338 : vector<8x128xf32>
    %cst_67 = arith.constant dense<0.000000e+00> : vector<8x128xf32>
    %340 = tpu.matmul %297, %24, %cst_67 {dimension_numbers = #tpu.dot_dimension_numbers<[1], [0], [0], [1], [0, 0, 1, 1], [], []>} : vector<8x32xf32>, vector<32x128xf32>, vector<8x128xf32> -> vector<8x128xf32>
    %341 = arith.addf %339, %340 : vector<8x128xf32>
    %342 = arith.negf %341 : vector<8x128xf32>
    %343 = math.exp %342 : vector<8x128xf32>
    %cst_68 = arith.constant 1.000000e+00 : f32
    %344 = vector.broadcast %cst_68 : f32 to vector<8x128xf32>
    %345 = arith.addf %344, %343 : vector<8x128xf32>
    %346 = arith.divf %344, %345 : vector<8x128xf32>
    %347 = math.tanh %341 : vector<8x128xf32>
    %348 = vector.extract_strided_slice %346 {offsets = [0, 0], sizes = [8, 32], strides = [1, 1]} : vector<8x128xf32> to vector<8x32xf32>
    %349 = vector.extract_strided_slice %346 {offsets = [0, 32], sizes = [8, 32], strides = [1, 1]} : vector<8x128xf32> to vector<8x32xf32>
    %350 = vector.extract_strided_slice %347 {offsets = [0, 64], sizes = [8, 32], strides = [1, 1]} : vector<8x128xf32> to vector<8x32xf32>
    %351 = vector.extract_strided_slice %346 {offsets = [0, 96], sizes = [8, 32], strides = [1, 1]} : vector<8x128xf32> to vector<8x32xf32>
    %352 = arith.mulf %349, %300 : vector<8x32xf32>
    %353 = arith.mulf %348, %350 : vector<8x32xf32>
    %354 = arith.addf %352, %353 : vector<8x32xf32>
    %355 = math.tanh %354 : vector<8x32xf32>
    %356 = arith.mulf %351, %355 : vector<8x32xf32>
    %357 = vector.shape_cast %10 : vector<8x1xi1> to vector<8x1xi1>
    %358 = vector.broadcast %357 : vector<8x1xi1> to vector<8x32xi1>
    %359 = arith.select %358, %356, %297 : vector<8x32xi1>, vector<8x32xf32>
    %360 = vector.shape_cast %10 : vector<8x1xi1> to vector<8x1xi1>
    %361 = vector.broadcast %360 : vector<8x1xi1> to vector<8x32xi1>
    %362 = arith.select %361, %354, %300 : vector<8x32xi1>, vector<8x32xf32>
    %cst_69 = arith.constant 0.000000e+00 : f32
    %363 = vector.shape_cast %10 : vector<8x1xi1> to vector<8x1xi1>
    %364 = vector.broadcast %363 : vector<8x1xi1> to vector<8x32xi1>
    %365 = vector.broadcast %cst_69 : f32 to vector<8x32xf32>
    %366 = arith.select %364, %356, %365 : vector<8x32xi1>, vector<8x32xf32>
    %cst_70 = arith.constant dense<0.000000e+00> : vector<8x128xf32>
    %367 = tpu.matmul %366, %27, %cst_70 {dimension_numbers = #tpu.dot_dimension_numbers<[1], [0], [0], [1], [0, 0, 1, 1], [], []>} : vector<8x32xf32>, vector<32x128xf32>, vector<8x128xf32> -> vector<8x128xf32>
    %368 = vector.broadcast %28 : vector<1x128xf32> to vector<8x128xf32>
    %369 = arith.addf %367, %368 : vector<8x128xf32>
    %c32 = arith.constant 32 : index
    %c0_71 = arith.constant 0 : index
    %370 = vector.load %arg10[%c32, %c0_71] : memref<64x128xf32, #tpu.memory_space<vmem>>, vector<8x128xf32>
    tpu.vector_store %arg10[%c32, %c0_71], %369 {strides = array<i32>} : memref<64x128xf32, #tpu.memory_space<vmem>>, vector<8x128xf32>,
    %371 = vector.extract_strided_slice %22 {offsets = [48, 0], sizes = [8, 128], strides = [1, 1]} : vector<64x128xf32> to vector<8x128xf32>
    %cst_72 = arith.constant dense<0.000000e+00> : vector<8x128xf32>
    %372 = tpu.matmul %329, %23, %cst_72 {dimension_numbers = #tpu.dot_dimension_numbers<[1], [0], [0], [1], [0, 0, 1, 1], [], []>} : vector<8x32xf32>, vector<32x128xf32>, vector<8x128xf32> -> vector<8x128xf32>
    %373 = arith.addf %371, %372 : vector<8x128xf32>
    %374 = arith.negf %373 : vector<8x128xf32>
    %375 = math.exp %374 : vector<8x128xf32>
    %cst_73 = arith.constant 1.000000e+00 : f32
    %376 = vector.broadcast %cst_73 : f32 to vector<8x128xf32>
    %377 = arith.addf %376, %375 : vector<8x128xf32>
    %378 = arith.divf %376, %377 : vector<8x128xf32>
    %379 = math.tanh %373 : vector<8x128xf32>
    %380 = vector.extract_strided_slice %378 {offsets = [0, 0], sizes = [8, 32], strides = [1, 1]} : vector<8x128xf32> to vector<8x32xf32>
    %381 = vector.extract_strided_slice %378 {offsets = [0, 32], sizes = [8, 32], strides = [1, 1]} : vector<8x128xf32> to vector<8x32xf32>
    %382 = vector.extract_strided_slice %379 {offsets = [0, 64], sizes = [8, 32], strides = [1, 1]} : vector<8x128xf32> to vector<8x32xf32>
    %383 = vector.extract_strided_slice %378 {offsets = [0, 96], sizes = [8, 32], strides = [1, 1]} : vector<8x128xf32> to vector<8x32xf32>
    %384 = arith.mulf %381, %332 : vector<8x32xf32>
    %385 = arith.mulf %380, %382 : vector<8x32xf32>
    %386 = arith.addf %384, %385 : vector<8x32xf32>
    %387 = math.tanh %386 : vector<8x32xf32>
    %388 = arith.mulf %383, %387 : vector<8x32xf32>
    %389 = vector.shape_cast %14 : vector<8x1xi1> to vector<8x1xi1>
    %390 = vector.broadcast %389 : vector<8x1xi1> to vector<8x32xi1>
    %391 = arith.select %390, %388, %329 : vector<8x32xi1>, vector<8x32xf32>
    %392 = vector.shape_cast %14 : vector<8x1xi1> to vector<8x1xi1>
    %393 = vector.broadcast %392 : vector<8x1xi1> to vector<8x32xi1>
    %394 = arith.select %393, %386, %332 : vector<8x32xi1>, vector<8x32xf32>
    %cst_74 = arith.constant 0.000000e+00 : f32
    %395 = vector.shape_cast %14 : vector<8x1xi1> to vector<8x1xi1>
    %396 = vector.broadcast %395 : vector<8x1xi1> to vector<8x32xi1>
    %397 = vector.broadcast %cst_74 : f32 to vector<8x32xf32>
    %398 = arith.select %396, %388, %397 : vector<8x32xi1>, vector<8x32xf32>
    %cst_75 = arith.constant dense<0.000000e+00> : vector<8x128xf32>
    %399 = tpu.matmul %336, %25, %cst_75 {dimension_numbers = #tpu.dot_dimension_numbers<[1], [0], [0], [1], [0, 0, 1, 1], [], []>} : vector<8x32xf32>, vector<32x128xf32>, vector<8x128xf32> -> vector<8x128xf32>
    %400 = vector.broadcast %26 : vector<1x128xf32> to vector<8x128xf32>
    %401 = arith.addf %399, %400 : vector<8x128xf32>
    %cst_76 = arith.constant dense<0.000000e+00> : vector<8x128xf32>
    %402 = tpu.matmul %359, %24, %cst_76 {dimension_numbers = #tpu.dot_dimension_numbers<[1], [0], [0], [1], [0, 0, 1, 1], [], []>} : vector<8x32xf32>, vector<32x128xf32>, vector<8x128xf32> -> vector<8x128xf32>
    %403 = arith.addf %401, %402 : vector<8x128xf32>
    %404 = arith.negf %403 : vector<8x128xf32>
    %405 = math.exp %404 : vector<8x128xf32>
    %cst_77 = arith.constant 1.000000e+00 : f32
    %406 = vector.broadcast %cst_77 : f32 to vector<8x128xf32>
    %407 = arith.addf %406, %405 : vector<8x128xf32>
    %408 = arith.divf %406, %407 : vector<8x128xf32>
    %409 = math.tanh %403 : vector<8x128xf32>
    %410 = vector.extract_strided_slice %408 {offsets = [0, 0], sizes = [8, 32], strides = [1, 1]} : vector<8x128xf32> to vector<8x32xf32>
    %411 = vector.extract_strided_slice %408 {offsets = [0, 32], sizes = [8, 32], strides = [1, 1]} : vector<8x128xf32> to vector<8x32xf32>
    %412 = vector.extract_strided_slice %409 {offsets = [0, 64], sizes = [8, 32], strides = [1, 1]} : vector<8x128xf32> to vector<8x32xf32>
    %413 = vector.extract_strided_slice %408 {offsets = [0, 96], sizes = [8, 32], strides = [1, 1]} : vector<8x128xf32> to vector<8x32xf32>
    %414 = arith.mulf %411, %362 : vector<8x32xf32>
    %415 = arith.mulf %410, %412 : vector<8x32xf32>
    %416 = arith.addf %414, %415 : vector<8x32xf32>
    %417 = math.tanh %416 : vector<8x32xf32>
    %418 = arith.mulf %413, %417 : vector<8x32xf32>
    %419 = vector.shape_cast %12 : vector<8x1xi1> to vector<8x1xi1>
    %420 = vector.broadcast %419 : vector<8x1xi1> to vector<8x32xi1>
    %421 = arith.select %420, %418, %359 : vector<8x32xi1>, vector<8x32xf32>
    %422 = vector.shape_cast %12 : vector<8x1xi1> to vector<8x1xi1>
    %423 = vector.broadcast %422 : vector<8x1xi1> to vector<8x32xi1>
    %424 = arith.select %423, %416, %362 : vector<8x32xi1>, vector<8x32xf32>
    %cst_78 = arith.constant 0.000000e+00 : f32
    %425 = vector.shape_cast %12 : vector<8x1xi1> to vector<8x1xi1>
    %426 = vector.broadcast %425 : vector<8x1xi1> to vector<8x32xi1>
    %427 = vector.broadcast %cst_78 : f32 to vector<8x32xf32>
    %428 = arith.select %426, %418, %427 : vector<8x32xi1>, vector<8x32xf32>
    %cst_79 = arith.constant dense<0.000000e+00> : vector<8x128xf32>
    %429 = tpu.matmul %428, %27, %cst_79 {dimension_numbers = #tpu.dot_dimension_numbers<[1], [0], [0], [1], [0, 0, 1, 1], [], []>} : vector<8x32xf32>, vector<32x128xf32>, vector<8x128xf32> -> vector<8x128xf32>
    %430 = vector.broadcast %28 : vector<1x128xf32> to vector<8x128xf32>
    %431 = arith.addf %429, %430 : vector<8x128xf32>
    %c40 = arith.constant 40 : index
    %c0_80 = arith.constant 0 : index
    %432 = vector.load %arg10[%c40, %c0_80] : memref<64x128xf32, #tpu.memory_space<vmem>>, vector<8x128xf32>
    tpu.vector_store %arg10[%c40, %c0_80], %431 {strides = array<i32>} : memref<64x128xf32, #tpu.memory_space<vmem>>, vector<8x128xf32>,
    %433 = vector.extract_strided_slice %22 {offsets = [56, 0], sizes = [8, 128], strides = [1, 1]} : vector<64x128xf32> to vector<8x128xf32>
    %cst_81 = arith.constant dense<0.000000e+00> : vector<8x128xf32>
    %434 = tpu.matmul %391, %23, %cst_81 {dimension_numbers = #tpu.dot_dimension_numbers<[1], [0], [0], [1], [0, 0, 1, 1], [], []>} : vector<8x32xf32>, vector<32x128xf32>, vector<8x128xf32> -> vector<8x128xf32>
    %435 = arith.addf %433, %434 : vector<8x128xf32>
    %436 = arith.negf %435 : vector<8x128xf32>
    %437 = math.exp %436 : vector<8x128xf32>
    %cst_82 = arith.constant 1.000000e+00 : f32
    %438 = vector.broadcast %cst_82 : f32 to vector<8x128xf32>
    %439 = arith.addf %438, %437 : vector<8x128xf32>
    %440 = arith.divf %438, %439 : vector<8x128xf32>
    %441 = math.tanh %435 : vector<8x128xf32>
    %442 = vector.extract_strided_slice %440 {offsets = [0, 0], sizes = [8, 32], strides = [1, 1]} : vector<8x128xf32> to vector<8x32xf32>
    %443 = vector.extract_strided_slice %440 {offsets = [0, 32], sizes = [8, 32], strides = [1, 1]} : vector<8x128xf32> to vector<8x32xf32>
    %444 = vector.extract_strided_slice %441 {offsets = [0, 64], sizes = [8, 32], strides = [1, 1]} : vector<8x128xf32> to vector<8x32xf32>
    %445 = vector.extract_strided_slice %440 {offsets = [0, 96], sizes = [8, 32], strides = [1, 1]} : vector<8x128xf32> to vector<8x32xf32>
    %446 = arith.mulf %443, %394 : vector<8x32xf32>
    %447 = arith.mulf %442, %444 : vector<8x32xf32>
    %448 = arith.addf %446, %447 : vector<8x32xf32>
    %449 = math.tanh %448 : vector<8x32xf32>
    %450 = arith.mulf %445, %449 : vector<8x32xf32>
    %451 = vector.shape_cast %16 : vector<8x1xi1> to vector<8x1xi1>
    %452 = vector.broadcast %451 : vector<8x1xi1> to vector<8x32xi1>
    %453 = arith.select %452, %450, %391 : vector<8x32xi1>, vector<8x32xf32>
    %454 = vector.shape_cast %16 : vector<8x1xi1> to vector<8x1xi1>
    %455 = vector.broadcast %454 : vector<8x1xi1> to vector<8x32xi1>
    %456 = arith.select %455, %448, %394 : vector<8x32xi1>, vector<8x32xf32>
    %cst_83 = arith.constant 0.000000e+00 : f32
    %457 = vector.shape_cast %16 : vector<8x1xi1> to vector<8x1xi1>
    %458 = vector.broadcast %457 : vector<8x1xi1> to vector<8x32xi1>
    %459 = vector.broadcast %cst_83 : f32 to vector<8x32xf32>
    %460 = arith.select %458, %450, %459 : vector<8x32xi1>, vector<8x32xf32>
    %cst_84 = arith.constant dense<0.000000e+00> : vector<8x128xf32>
    %461 = tpu.matmul %398, %25, %cst_84 {dimension_numbers = #tpu.dot_dimension_numbers<[1], [0], [0], [1], [0, 0, 1, 1], [], []>} : vector<8x32xf32>, vector<32x128xf32>, vector<8x128xf32> -> vector<8x128xf32>
    %462 = vector.broadcast %26 : vector<1x128xf32> to vector<8x128xf32>
    %463 = arith.addf %461, %462 : vector<8x128xf32>
    %cst_85 = arith.constant dense<0.000000e+00> : vector<8x128xf32>
    %464 = tpu.matmul %421, %24, %cst_85 {dimension_numbers = #tpu.dot_dimension_numbers<[1], [0], [0], [1], [0, 0, 1, 1], [], []>} : vector<8x32xf32>, vector<32x128xf32>, vector<8x128xf32> -> vector<8x128xf32>
    %465 = arith.addf %463, %464 : vector<8x128xf32>
    %466 = arith.negf %465 : vector<8x128xf32>
    %467 = math.exp %466 : vector<8x128xf32>
    %cst_86 = arith.constant 1.000000e+00 : f32
    %468 = vector.broadcast %cst_86 : f32 to vector<8x128xf32>
    %469 = arith.addf %468, %467 : vector<8x128xf32>
    %470 = arith.divf %468, %469 : vector<8x128xf32>
    %471 = math.tanh %465 : vector<8x128xf32>
    %472 = vector.extract_strided_slice %470 {offsets = [0, 0], sizes = [8, 32], strides = [1, 1]} : vector<8x128xf32> to vector<8x32xf32>
    %473 = vector.extract_strided_slice %470 {offsets = [0, 32], sizes = [8, 32], strides = [1, 1]} : vector<8x128xf32> to vector<8x32xf32>
    %474 = vector.extract_strided_slice %471 {offsets = [0, 64], sizes = [8, 32], strides = [1, 1]} : vector<8x128xf32> to vector<8x32xf32>
    %475 = vector.extract_strided_slice %470 {offsets = [0, 96], sizes = [8, 32], strides = [1, 1]} : vector<8x128xf32> to vector<8x32xf32>
    %476 = arith.mulf %473, %424 : vector<8x32xf32>
    %477 = arith.mulf %472, %474 : vector<8x32xf32>
    %478 = arith.addf %476, %477 : vector<8x32xf32>
    %479 = math.tanh %478 : vector<8x32xf32>
    %480 = arith.mulf %475, %479 : vector<8x32xf32>
    %481 = vector.shape_cast %14 : vector<8x1xi1> to vector<8x1xi1>
    %482 = vector.broadcast %481 : vector<8x1xi1> to vector<8x32xi1>
    %483 = arith.select %482, %480, %421 : vector<8x32xi1>, vector<8x32xf32>
    %484 = vector.shape_cast %14 : vector<8x1xi1> to vector<8x1xi1>
    %485 = vector.broadcast %484 : vector<8x1xi1> to vector<8x32xi1>
    %486 = arith.select %485, %478, %424 : vector<8x32xi1>, vector<8x32xf32>
    %cst_87 = arith.constant 0.000000e+00 : f32
    %487 = vector.shape_cast %14 : vector<8x1xi1> to vector<8x1xi1>
    %488 = vector.broadcast %487 : vector<8x1xi1> to vector<8x32xi1>
    %489 = vector.broadcast %cst_87 : f32 to vector<8x32xf32>
    %490 = arith.select %488, %480, %489 : vector<8x32xi1>, vector<8x32xf32>
    %cst_88 = arith.constant dense<0.000000e+00> : vector<8x128xf32>
    %491 = tpu.matmul %490, %27, %cst_88 {dimension_numbers = #tpu.dot_dimension_numbers<[1], [0], [0], [1], [0, 0, 1, 1], [], []>} : vector<8x32xf32>, vector<32x128xf32>, vector<8x128xf32> -> vector<8x128xf32>
    %492 = vector.broadcast %28 : vector<1x128xf32> to vector<8x128xf32>
    %493 = arith.addf %491, %492 : vector<8x128xf32>
    %c48 = arith.constant 48 : index
    %c0_89 = arith.constant 0 : index
    %494 = vector.load %arg10[%c48, %c0_89] : memref<64x128xf32, #tpu.memory_space<vmem>>, vector<8x128xf32>
    tpu.vector_store %arg10[%c48, %c0_89], %493 {strides = array<i32>} : memref<64x128xf32, #tpu.memory_space<vmem>>, vector<8x128xf32>,
    %cst_90 = arith.constant dense<0.000000e+00> : vector<8x128xf32>
    %495 = tpu.matmul %460, %25, %cst_90 {dimension_numbers = #tpu.dot_dimension_numbers<[1], [0], [0], [1], [0, 0, 1, 1], [], []>} : vector<8x32xf32>, vector<32x128xf32>, vector<8x128xf32> -> vector<8x128xf32>
    %496 = vector.broadcast %26 : vector<1x128xf32> to vector<8x128xf32>
    %497 = arith.addf %495, %496 : vector<8x128xf32>
    %cst_91 = arith.constant dense<0.000000e+00> : vector<8x128xf32>
    %498 = tpu.matmul %483, %24, %cst_91 {dimension_numbers = #tpu.dot_dimension_numbers<[1], [0], [0], [1], [0, 0, 1, 1], [], []>} : vector<8x32xf32>, vector<32x128xf32>, vector<8x128xf32> -> vector<8x128xf32>
    %499 = arith.addf %497, %498 : vector<8x128xf32>
    %500 = arith.negf %499 : vector<8x128xf32>
    %501 = math.exp %500 : vector<8x128xf32>
    %cst_92 = arith.constant 1.000000e+00 : f32
    %502 = vector.broadcast %cst_92 : f32 to vector<8x128xf32>
    %503 = arith.addf %502, %501 : vector<8x128xf32>
    %504 = arith.divf %502, %503 : vector<8x128xf32>
    %505 = math.tanh %499 : vector<8x128xf32>
    %506 = vector.extract_strided_slice %504 {offsets = [0, 0], sizes = [8, 32], strides = [1, 1]} : vector<8x128xf32> to vector<8x32xf32>
    %507 = vector.extract_strided_slice %504 {offsets = [0, 32], sizes = [8, 32], strides = [1, 1]} : vector<8x128xf32> to vector<8x32xf32>
    %508 = vector.extract_strided_slice %505 {offsets = [0, 64], sizes = [8, 32], strides = [1, 1]} : vector<8x128xf32> to vector<8x32xf32>
    %509 = vector.extract_strided_slice %504 {offsets = [0, 96], sizes = [8, 32], strides = [1, 1]} : vector<8x128xf32> to vector<8x32xf32>
    %510 = arith.mulf %507, %486 : vector<8x32xf32>
    %511 = arith.mulf %506, %508 : vector<8x32xf32>
    %512 = arith.addf %510, %511 : vector<8x32xf32>
    %513 = math.tanh %512 : vector<8x32xf32>
    %514 = arith.mulf %509, %513 : vector<8x32xf32>
    %515 = vector.shape_cast %16 : vector<8x1xi1> to vector<8x1xi1>
    %516 = vector.broadcast %515 : vector<8x1xi1> to vector<8x32xi1>
    %517 = arith.select %516, %514, %483 : vector<8x32xi1>, vector<8x32xf32>
    %518 = vector.shape_cast %16 : vector<8x1xi1> to vector<8x1xi1>
    %519 = vector.broadcast %518 : vector<8x1xi1> to vector<8x32xi1>
    %520 = arith.select %519, %512, %486 : vector<8x32xi1>, vector<8x32xf32>
    %cst_93 = arith.constant 0.000000e+00 : f32
    %521 = vector.shape_cast %16 : vector<8x1xi1> to vector<8x1xi1>
    %522 = vector.broadcast %521 : vector<8x1xi1> to vector<8x32xi1>
    %523 = vector.broadcast %cst_93 : f32 to vector<8x32xf32>
    %524 = arith.select %522, %514, %523 : vector<8x32xi1>, vector<8x32xf32>
    %cst_94 = arith.constant dense<0.000000e+00> : vector<8x128xf32>
    %525 = tpu.matmul %524, %27, %cst_94 {dimension_numbers = #tpu.dot_dimension_numbers<[1], [0], [0], [1], [0, 0, 1, 1], [], []>} : vector<8x32xf32>, vector<32x128xf32>, vector<8x128xf32> -> vector<8x128xf32>
    %526 = vector.broadcast %28 : vector<1x128xf32> to vector<8x128xf32>
    %527 = arith.addf %525, %526 : vector<8x128xf32>
    %c56 = arith.constant 56 : index
    %c0_95 = arith.constant 0 : index
    %528 = vector.load %arg10[%c56, %c0_95] : memref<64x128xf32, #tpu.memory_space<vmem>>, vector<8x128xf32>
    tpu.vector_store %arg10[%c56, %c0_95], %527 {strides = array<i32>} : memref<64x128xf32, #tpu.memory_space<vmem>>, vector<8x128xf32>,
    %c0_96 = arith.constant 0 : index
    %c0_97 = arith.constant 0 : index
    %c0_98 = arith.constant 0 : index
    %529 = vector.load %arg11[%c0_96, %c0_97, %c0_98] : memref<2x8x32xf32, #tpu.memory_space<vmem>>, vector<1x8x32xf32>
    %530 = vector.shape_cast %529 : vector<1x8x32xf32> to vector<8x32xf32>
    %531 = vector.shape_cast %453 : vector<8x32xf32> to vector<1x8x32xf32>
    tpu.vector_store %arg11[%c0_96, %c0_97, %c0_98], %531 {strides = array<i32>} : memref<2x8x32xf32, #tpu.memory_space<vmem>>, vector<1x8x32xf32>,
    %c0_99 = arith.constant 0 : index
    %c0_100 = arith.constant 0 : index
    %c0_101 = arith.constant 0 : index
    %532 = vector.load %arg12[%c0_99, %c0_100, %c0_101] : memref<2x8x32xf32, #tpu.memory_space<vmem>>, vector<1x8x32xf32>
    %533 = vector.shape_cast %532 : vector<1x8x32xf32> to vector<8x32xf32>
    %534 = vector.shape_cast %456 : vector<8x32xf32> to vector<1x8x32xf32>
    tpu.vector_store %arg12[%c0_99, %c0_100, %c0_101], %534 {strides = array<i32>} : memref<2x8x32xf32, #tpu.memory_space<vmem>>, vector<1x8x32xf32>,
    %c1 = arith.constant 1 : index
    %c0_102 = arith.constant 0 : index
    %c0_103 = arith.constant 0 : index
    %535 = vector.load %arg11[%c1, %c0_102, %c0_103] : memref<2x8x32xf32, #tpu.memory_space<vmem>>, vector<1x8x32xf32>
    %536 = vector.shape_cast %535 : vector<1x8x32xf32> to vector<8x32xf32>
    %537 = vector.shape_cast %517 : vector<8x32xf32> to vector<1x8x32xf32>
    tpu.vector_store %arg11[%c1, %c0_102, %c0_103], %537 {strides = array<i32>} : memref<2x8x32xf32, #tpu.memory_space<vmem>>, vector<1x8x32xf32>,
    %c1_104 = arith.constant 1 : index
    %c0_105 = arith.constant 0 : index
    %c0_106 = arith.constant 0 : index
    %538 = vector.load %arg12[%c1_104, %c0_105, %c0_106] : memref<2x8x32xf32, #tpu.memory_space<vmem>>, vector<1x8x32xf32>
    %539 = vector.shape_cast %538 : vector<1x8x32xf32> to vector<8x32xf32>
    %540 = vector.shape_cast %520 : vector<8x32xf32> to vector<1x8x32xf32>
    tpu.vector_store %arg12[%c1_104, %c0_105, %c0_106], %540 {strides = array<i32>} : memref<2x8x32xf32, #tpu.memory_space<vmem>>, vector<1x8x32xf32>,
    return
  }
}

</mosaic_0001>

<bundles_post_ra>
// kernel: forward.1
= control target key start
LH: loop header
LB: loop body
LE: loop exit
PB: predicated region body
PF: predicated region fallthrough
CT: control target
= control target key end

     0   :  { %vm63_vm0 = vcmask 261120   ;;  %v1886_v9 = vmov 0.0   ;;  %s1887_s22 = smov 64   ;;  %s1888_s23 = smov 32   ;;  %v1889_v31 = vmov 0   ;;  %s2758_s2 = inlined_call_operand.vmem [shape: f32[32,128], index: 2, kind: input, shape index: {}]   ;;  %s2759_s3 = inlined_call_operand.vmem [shape: f32[32,128], index: 3, kind: input, shape index: {}]   ;;  %s2760_s1 = inlined_call_operand.vmem [shape: f32[64,32], index: 1, kind: input, shape index: {}]   ;;  %s2761_s4 = inlined_call_operand.vmem [shape: f32[1,128], index: 4, kind: input, shape index: {}]   ;;  %s2762_s0 = inlined_call_operand.vmem [shape: s32[8,1], index: 0, kind: input, shape index: {}]   ;;  %s2763_s5 = inlined_call_operand.vmem [shape: f32[32,128], index: 5, kind: input, shape index: {}]   ;;  %s2764_s6 = inlined_call_operand.vmem [shape: f32[32,128], index: 6, kind: input, shape index: {}]   ;;  %s2765_s7 = inlined_call_operand.vmem [shape: f32[1,128], index: 7, kind: input, shape index: {}]   ;;  %s2766_s8 = inlined_call_operand.vmem [shape: f32[32,128], index: 8, kind: input, shape index: {}]   ;;  %s2767_s9 = inlined_call_operand.vmem [shape: f32[1,128], index: 9, kind: input, shape index: {}]   ;;  %s2768_s10 = inlined_call_operand.vmem [shape: f32[64,128], index: 10, kind: output, shape index: {0}]   ;;  %s2769_s11 = inlined_call_operand.vmem [shape: f32[2,8,32], index: 11, kind: output, shape index: {1}]   ;;  %s2770_s12 = inlined_call_operand.vmem [shape: f32[2,8,32], index: 12, kind: output, shape index: {2}]  }
   0x1   :  { %v58_v0 = vld [vmem:[%s2758_s2 + $0x18] sm:$0xff]  ;;  %v57_v1 = vld [vmem:[%s2758_s2 + $0x10] sm:$0xff]  ;;  %v56_v4 = vld [vmem:[%s2758_s2 + $0x8] sm:$0xff]  ;;  %1733 = vset.pattern.permute.xlu1 %v1889_v31  ;;  %1734 = vset.pattern.permute.xlu2 %v1889_v31  ;;  %s1890_s20 = smov 96  }
   0x2   :  { %v1965_v2 = vld [vmem:[%s2759_s3 + $0x18] sm:$0xff]  ;;  %100 = vmatpush.msra.mxu0 %v58_v0  ;;  %v1971_v3 = vld [vmem:[%s2759_s3 + $0x10] sm:$0xff]  ;;  %v1979_v5 = vld [vmem:[%s2759_s3 + $0x8] sm:$0xff]  ;;  %1735 = vset.pattern.permute.xlu0 %v1889_v31 }
   0x3   :  { %162 = vmatpush.msra.mxu1 %v1965_v2  ;;  %232 = vmatpush.msra.mxu2 %v1965_v2  ;;  %v55_v6 = vld [vmem:[%s2758_s2] sm:$0xff]  ;;  %v2026_v38 = vld [vmem:[%s2763_s5 + $0x18] sm:$0xff]  ;;  %v2031_v39 = vld [vmem:[%s2763_s5 + $0x10] sm:$0xff] }
   0x4   :  { %101 = vmatpush.msra.mxu0 %v57_v1  ;;  %v1989_v7 = vld [vmem:[%s2759_s3] sm:$0xff]  ;;  %301 = vmatpush.msra.mxu3 %v2026_v38  ;;  %v2037_v40 = vld [vmem:[%s2763_s5 + $0x8] sm:$0xff]  ;;  %v2063_v46 = vld [vmem:[%s2764_s6 + $0x18] sm:$0xff] }
   0x5   :  { %163 = vmatpush.msra.mxu1 %v1971_v3  ;;  %233 = vmatpush.msra.mxu2 %v1971_v3  ;;  %v47_v8 = vld [vmem:[%s2760_s1] sm:$0xff]  ;;  %v2068_v47 = vld [vmem:[%s2764_s6 + $0x10] sm:$0xff]  ;;  %v48_v48 = vld [vmem:[%s2760_s1 + $0x8] sm:$0xff] }
   0x6   :  { %102 = vmatpush.msra.mxu0 %v56_v4  ;;  %v2004_v10 = vld [vmem:[%s2761_s4] ss:$0 sm:$0xff]  ;;  %302 = vmatpush.msra.mxu3 %v2031_v39  ;;  %v2078_v49 = vld [vmem:[%s2764_s6 + $0x8] sm:$0xff] }
   0x7   :  { %164 = vmatpush.msra.mxu1 %v1979_v5  ;;  %234 = vmatpush.msra.mxu2 %v1979_v5  ;;  %v2018_v36 = vld [vmem:[%s2762_s0] sm:$0xff] }
   0x8   :  { %103 = vmatpush.msra.mxu0 %v55_v6  ;;  %vm39_vm5 = vcmp.gt.s32.totalorder %v2018_v36, 0  ;;  %v2043_v41 = vld [vmem:[%s2763_s5] sm:$0xff]  ;;  %303 = vmatpush.msra.mxu3 %v2037_v40  ;;  %vm40_vm15 = vcmp.gt.s32.totalorder %v2018_v36, 1 }
   0x9   :  { %165 = vmatpush.msra.mxu1 %v1989_v7  ;;  %1672 = vmatmul.msk.f32.vlgmr.msra.gmra.mxu0 %vm63_vm0, %v47_v8  ;;  %v208_v37 = vsel %vm39_vm5, 1, %v1889_v31  ;;  %v2084_v50 = vld [vmem:[%s2764_s6] sm:$0xff] }
   0xa   :  { %166 = vmatmul.f32.vlgmr.msra.gmra.mxu1 %v1886_v9  ;;  %235 = vmatpush.msra.mxu2 %v1989_v7  ;;  %v2103_v54 = vld [vmem:[%s2765_s7] ss:$0 sm:$0xff] }
   0xb   :  { %304 = vmatpush.msra.mxu3 %v2043_v41  ;;  %321 = vmatpush.msrb.mxu1 %v2063_v46 }
   0xd   :  { %415 = vmatpush.msrb.mxu3 %v1965_v2  ;;  %322 = vmatpush.msrb.mxu1 %v2068_v47 }
   0xf   :  { %416 = vmatpush.msrb.mxu3 %v1971_v3  ;;  %323 = vmatpush.msrb.mxu1 %v2078_v49 }
  0x11   :  { %417 = vmatpush.msrb.mxu3 %v1979_v5  ;;  %1673 = vmatmul.msk.f32.gmra.mxu0 %vm63_vm0, %v48_v48 }
  0x12   :  { %324 = vmatpush.msrb.mxu1 %v2084_v50 }
  0x13   :  { %418 = vmatpush.msrb.mxu3 %v1989_v7  ;;  %325 = vmatmul.f32.vlgmr.msrb.gmra.mxu1 %v1886_v9 }
  0x14   :  { %486 = vmatpush.msra.mxu1 %v2026_v38 }
  0x16   :  { %487 = vmatpush.msra.mxu1 %v2031_v39 }
  0x18   :  { %488 = vmatpush.msra.mxu1 %v2037_v40 }
  0x1a   :  { %489 = vmatpush.msra.mxu1 %v2043_v41 }
  0x1c   :  { %598 = vmatpush.msrb.mxu1 %v1965_v2 }
  0x1e   :  { %599 = vmatpush.msrb.mxu1 %v1971_v3 }
  0x20   :  { %600 = vmatpush.msrb.mxu1 %v1979_v5 }
  0x22   :  { %601 = vmatpush.msrb.mxu1 %v1989_v7 }
  0x86   :  { %v105_v11 = vpop.f32.mrf.mxu0 }
  0x87   :  { %v167_v12 = vpop.f32.mrf.mxu1  ;;  %v106_v13 = vadd.f32 %v2004_v10, %v105_v11 }
  0x89   :  { %v170_v14 = vadd.f32 %v167_v12, %v106_v13 }
  0x8b   :  { %1739 = vtanh.f32 %v170_v14  ;;  %v1680_v16 = vmul.f32 -1.442695, %v170_v14 }
  0x8d   :  { %1741 = vpow2.f32 %v1680_v16 }
  0x8e   :  { %v108_v52 = vpop.f32.mrf.mxu0 }
  0x8f   :  { %v109_v53 = vadd.f32 %v2004_v10, %v108_v52 }
  0x90   :  { %v326_v55 = vpop.f32.mrf.mxu1 }
  0x91   :  { %v1740_v15 = vpop.eup %1739 }
  0x92   :  { %193 = vrot.lane.b32.xlu0 %v1740_v15, %s1887_s22 }
  0x93   :  { %v1742_v17 = vpop.eup %1741 }
  0x94   :  { %v174_v18 = vadd.f32 1.0, %v1742_v17 }
  0x96   :  { %1743 = vrcp.f32 %v174_v18  ;;  %v186_v24 = vand.u32 2147483648, %v174_v18  ;;  %vm180_vm2 = vweird.f32 %v174_v18  ;;  %v184_v25 = vand.u32 2147483647, %v174_v18 }
  0x98   :  { %v187_v27 = vor.u32 1.1754944e-38, %v186_v24  ;;  %vm185_vm4 = vcmp.eq.f32.partialorder %v184_v25, 8.507059e+37 }
  0x9c   :  { %v1744_v19 = vpop.eup %1743 }
  0x9d   :  { %v176_v20 = vmul.f32 %v1744_v19, %v174_v18  ;;  %vm181_vm1 = vweird.f32 %v1744_v19 }
  0x9e   :  { %vm182_vm3 = vmor %vm180_vm2, %vm181_vm1 }
  0x9f   :  { %v177_v21 = vsub.f32 1.0, %v176_v20 }
  0xa1   :  { %v178_v22 = vmul.f32 %v1744_v19, %v177_v21 }
  0xa3   :  { %v179_v23 = vadd.f32 %v1744_v19, %v178_v22 }
  0xa5   :  { %v183_v26 = vsel %vm182_vm3, %v1744_v19, %v179_v23 }
  0xa6   :  { %v188_v29 = vsel %vm185_vm4, %v187_v27, %v183_v26 }
  0xa7   :  { %v191_v32 = vmul.f32 0.0, %v188_v29 }
 0x104   :  { %v194_v28 = vpop.permute.xlu0 %193 }
 0x105   :  { %v196_v30 = vmul.f32 %v194_v28, %v188_v29 }
 0x107   :  { %198 = vrot.lane.b32.xlu0 %v196_v30, %s1888_s23 }
 0x179   :  { %v199_v33 = vpop.permute.xlu0 %198 }
 0x17a   :  { %v2012_v34 = vadd.f32 %v199_v33, %v191_v32 }
 0x17c   :  { %1745 = vtanh.f32 %v2012_v34 }
 0x182   :  { %v1746_v35 = vpop.eup %1745 }
 0x183   :  { %204 = vrot.lane.b32.xlu1 %v1746_v35, %s1887_s22 }
 0x18b   :  { %210 = vperm.xlu1 %1733, %v208_v37   ;;  %v278_v37 = vsel %vm40_vm15, 1, %v1889_v31 }
 0x1f5   :  { %v205_v42 = vpop.permute.xlu1 %204 }
 0x1f6   :  { %v207_v43 = vmul.f32 %v205_v42, %v188_v29 }
 0x1fd   :  { %v2051_v44 = vpop.permute.xlu1 %210 }
 0x1fe   :  { %vm212_vm6 = vcmp.eq.s32.totalorder %v2051_v44, 1 }
 0x1ff   :  { %v2056_v45 = vsel %vm212_vm6, %v207_v43, 0.0  ;;  %v2115_v42 = vsel %vm212_vm6, %v2012_v34, 0.0 }
 0x200   :  { %216 = vrot.lane.b32.xlu2 %v2056_v45, %s1888_s23 }
 0x25a   :  { %v217_v51 = vpop.permute.xlu2 %216 }
 0x25b   :  { %1681 = vmatmul.msk.f32.vlgmr.msra.gmra.mxu2 %vm63_vm0, %v217_v51  ;;  %1683 = vmatmul.msk.f32.vlgmr.msra.gmra.mxu3 %vm63_vm0, %v217_v51 }
 0x2de   :  { %v237_v56 = vpop.f32.mrf.mxu2  ;;  %v306_v57 = vpop.f32.mrf.mxu3 }
 0x2df   :  { %v240_v58 = vadd.f32 %v237_v56, %v109_v53  ;;  %v307_v59 = vadd.f32 %v2103_v54, %v306_v57 }
 0x2e1   :  { %1747 = vtanh.f32 %v240_v58  ;;  %v329_v60 = vadd.f32 %v326_v55, %v307_v59  ;;  %v1682_v4 = vmul.f32 -1.442695, %v240_v58 }
 0x2e3   :  { %1749 = vtanh.f32 %v329_v60  ;;  %v1684_v63 = vmul.f32 -1.442695, %v329_v60 }
 0x2e5   :  { %1751 = vpow2.f32 %v1684_v63 }
 0x2e7   :  { %v1748_v61 = vpop.eup %1747 }
 0x2e8   :  { %263 = vrot.lane.b32.xlu0 %v1748_v61, %s1887_s22 }
 0x2e9   :  { %v1750_v62 = vpop.eup %1749 }
 0x2ea   :  { %352 = vrot.lane.b32.xlu2 %v1750_v62, %s1887_s22 }
 0x2eb   :  { %v1752_v0 = vpop.eup %1751 }
 0x2ec   :  { %v333_v1 = vadd.f32 1.0, %v1752_v0 }
 0x2ee   :  { %1753 = vrcp.f32 %v333_v1  ;;  %v345_v15 = vand.u32 2147483648, %v333_v1  ;;  %vm339_vm8 = vweird.f32 %v333_v1  ;;  %v343_v16 = vand.u32 2147483647, %v333_v1 }
 0x2ef   :  { %1755 = vpow2.f32 %v1682_v4  ;;  %v2156_v4 = vld [vmem:[%s2766_s8 + $0x10] sm:$0xff] }
 0x2f0   :  { %v346_v18 = vor.u32 1.1754944e-38, %v345_v15  ;;  %vm344_vm10 = vcmp.eq.f32.partialorder %v343_v16, 8.507059e+37 }
 0x2f4   :  { %v1754_v6 = vpop.eup %1753 }
 0x2f5   :  { %v335_v8 = vmul.f32 %v1754_v6, %v333_v1  ;;  %v1756_v11 = vpop.eup %1755  ;;  %vm340_vm7 = vweird.f32 %v1754_v6  ;;  %v49_v1 = vld [vmem:[%s2760_s1 + $0x10] sm:$0xff] }
 0x2f6   :  { %v244_v12 = vadd.f32 1.0, %v1756_v11  ;;  %vm341_vm9 = vmor %vm339_vm8, %vm340_vm7  ;;  %1674 = vmatmul.msk.f32.gmra.mxu0 %vm63_vm0, %v49_v1  ;;  %vm41_vm7 = vcmp.gt.s32.totalorder %v2018_v36, 2 }
 0x2f7   :  { %v336_v9 = vsub.f32 1.0, %v335_v8  ;;  %v2176_v8 = vld [vmem:[%s2766_s8] sm:$0xff] }
 0x2f8   :  { %1757 = vrcp.f32 %v244_v12  ;;  %v256_v27 = vand.u32 2147483648, %v244_v12  ;;  %vm250_vm12 = vweird.f32 %v244_v12  ;;  %v254_v28 = vand.u32 2147483647, %v244_v12 }
 0x2f9   :  { %v337_v13 = vmul.f32 %v1754_v6, %v336_v9 }
 0x2fa   :  { %v257_v30 = vor.u32 1.1754944e-38, %v256_v27  ;;  %vm255_vm14 = vcmp.eq.f32.partialorder %v254_v28, 8.507059e+37 }
 0x2fb   :  { %v338_v14 = vadd.f32 %v1754_v6, %v337_v13 }
 0x2fd   :  { %v342_v17 = vsel %vm341_vm9, %v1754_v6, %v338_v14  ;;  %v2163_v6 = vld [vmem:[%s2766_s8 + $0x8] sm:$0xff] }
 0x2fe   :  { %v1758_v19 = vpop.eup %1757  ;;  %v347_v21 = vsel %vm344_vm10, %v346_v18, %v342_v17  ;;  %v2214_v18 = vld [vmem:[%s2767_s9] ss:$0 sm:$0xff] }
 0x2ff   :  { %v246_v23 = vmul.f32 %v1758_v19, %v244_v12  ;;  %vm251_vm11 = vweird.f32 %v1758_v19  ;;  %v350_v52 = vmul.f32 0.0, %v347_v21 }
 0x300   :  { %vm252_vm13 = vmor %vm250_vm12, %vm251_vm11 }
 0x301   :  { %v247_v24 = vsub.f32 1.0, %v246_v23 }
 0x303   :  { %v248_v25 = vmul.f32 %v1758_v19, %v247_v24 }
 0x305   :  { %v249_v26 = vadd.f32 %v1758_v19, %v248_v25 }
 0x307   :  { %v253_v29 = vsel %vm252_vm13, %v1758_v19, %v249_v26 }
 0x308   :  { %v258_v33 = vsel %vm255_vm14, %v257_v30, %v253_v29 }
 0x309   :  { %v261_v43 = vmul.f32 %v258_v33, %v2115_v42 }
 0x344   :  { %v353_v20 = vpop.permute.xlu2 %352 }
 0x345   :  { %v355_v22 = vmul.f32 %v353_v20, %v347_v21 }
 0x347   :  { %357 = vrot.lane.b32.xlu1 %v355_v22, %s1888_s23 }
 0x35a   :  { %v264_v32 = vpop.permute.xlu0 %263 }
 0x35b   :  { %v266_v35 = vmul.f32 %v264_v32, %v258_v33 }
 0x35d   :  { %268 = vrot.lane.b32.xlu2 %v266_v35, %s1888_s23 }
 0x365   :  { %280 = vperm.xlu2 %1734, %v278_v37  }
 0x373   :  { %v111_v13 = vpop.f32.mrf.mxu0 }
 0x374   :  { %v112_v14 = vadd.f32 %v2004_v10, %v111_v13 }
 0x3b7   :  { %v269_v48 = vpop.permute.xlu2 %268 }
 0x3b8   :  { %v2118_v51 = vadd.f32 %v269_v48, %v261_v43 }
 0x3b9   :  { %v358_v53 = vpop.permute.xlu1 %357 }
 0x3ba   :  { %1759 = vtanh.f32 %v2118_v51  ;;  %v2121_v55 = vadd.f32 %v358_v53, %v350_v52 }
 0x3bc   :  { %1761 = vtanh.f32 %v2121_v55 }
 0x3bf   :  { %v2126_v34 = vpop.permute.xlu2 %280 }
 0x3c0   :  { %v1760_v56 = vpop.eup %1759  ;;  %vm282_vm1 = vcmp.eq.s32.totalorder %v2126_v34, 1 }
 0x3c1   :  { %274 = vrot.lane.b32.xlu1 %v1760_v56, %s1887_s22 }
 0x3c2   :  { %v1762_v57 = vpop.eup %1761 }
 0x3c3   :  { %363 = vrot.lane.b32.xlu0 %v1762_v57, %s1887_s22 }
 0x433   :  { %v275_v58 = vpop.permute.xlu1 %274 }
 0x434   :  { %v277_v59 = vmul.f32 %v275_v58, %v258_v33 }
 0x435   :  { %v364_v60 = vpop.permute.xlu0 %363 }
 0x436   :  { %v285_v61 = vsel %vm282_vm1, %v277_v59, 0.0  ;;  %v2134_v62 = vsel %vm282_vm1, %v277_v59, %v2056_v45  ;;  %v366_v63 = vmul.f32 %v364_v60, %v347_v21  ;;  %v2151_v45 = vld [vmem:[%s2766_s8 + $0x18] sm:$0xff] }
 0x437   :  { %470 = vrot.lane.b32.xlu1 %v285_v61, %s1888_s23  ;;  %399 = vrot.lane.b32.xlu2 %v2134_v62, %s1888_s23  ;;  %v461_v61 = vsel %vm41_vm7, 1, %v1889_v31  ;;  %vm42_vm7 = vcmp.gt.s32.totalorder %v2018_v36, 3 }
 0x438   :  { %v2141_v0 = vsel %vm212_vm6, %v366_v63, 0.0  ;;  %389 = vmatpush.msrb.mxu2 %v2151_v45  ;;  %572 = vmatpush.msra.mxu3 %v2151_v45 }
 0x439   :  { %373 = vrot.lane.b32.xlu0 %v2141_v0, %s1888_s23  ;;  %1324 = vmatpush.msrb.mxu0 %v2151_v45 }
 0x43a   :  { %390 = vmatpush.msrb.mxu2 %v2156_v4  ;;  %573 = vmatpush.msra.mxu3 %v2156_v4 }
 0x43b   :  { %1325 = vmatpush.msrb.mxu0 %v2156_v4 }
 0x43c   :  { %391 = vmatpush.msrb.mxu2 %v2163_v6  ;;  %574 = vmatpush.msra.mxu3 %v2163_v6 }
 0x43d   :  { %1326 = vmatpush.msrb.mxu0 %v2163_v6 }
 0x43e   :  { %392 = vmatpush.msrb.mxu2 %v2176_v8  ;;  %575 = vmatpush.msra.mxu3 %v2176_v8 }
 0x43f   :  { %1327 = vmatpush.msrb.mxu0 %v2176_v8 }
 0x440   :  { %506 = vmatpush.msra.mxu2 %v2063_v46 }
 0x441   :  { %1512 = vmatpush.msra.mxu0 %v2151_v45 }
 0x442   :  { %507 = vmatpush.msra.mxu2 %v2068_v47 }
 0x443   :  { %1513 = vmatpush.msra.mxu0 %v2156_v4 }
 0x444   :  { %508 = vmatpush.msra.mxu2 %v2078_v49 }
 0x445   :  { %1514 = vmatpush.msra.mxu0 %v2163_v6 }
 0x446   :  { %509 = vmatpush.msra.mxu2 %v2084_v50 }
 0x447   :  { %1515 = vmatpush.msra.mxu0 %v2176_v8 }
 0x491   :  { %v400_v9 = vpop.permute.xlu2 %399 }
 0x492   :  { %1686 = vmatmul.msk.f32.vlgmr.msrb.gmra.mxu3 %vm63_vm0, %v400_v9 }
 0x493   :  { %694 = vmatpush.msrb.mxu3 %v2063_v46 }
 0x495   :  { %695 = vmatpush.msrb.mxu3 %v2068_v47 }
 0x497   :  { %696 = vmatpush.msrb.mxu3 %v2078_v49 }
 0x499   :  { %697 = vmatpush.msrb.mxu3 %v2084_v50 }
 0x4a9   :  { %v471_v11 = vpop.permute.xlu1 %470 }
 0x4aa   :  { %1688 = vmatmul.msk.f32.vlgmr.msra.gmra.mxu1 %vm63_vm0, %v471_v11 }
 0x4ab   :  { %760 = vmatpush.msra.mxu1 %v2151_v45  ;;  %v374_v12 = vpop.permute.xlu0 %373 }
 0x4ac   :  { %1685 = vmatmul.msk.f32.vlgmr.msrb.gmra.mxu2 %vm63_vm0, %v374_v12 }
 0x4ad   :  { %761 = vmatpush.msra.mxu1 %v2156_v4  ;;  %669 = vmatpush.msrb.mxu2 %v2026_v38 }
 0x4af   :  { %762 = vmatpush.msra.mxu1 %v2163_v6  ;;  %670 = vmatpush.msrb.mxu2 %v2031_v39 }
 0x4b1   :  { %763 = vmatpush.msra.mxu1 %v2176_v8  ;;  %671 = vmatpush.msrb.mxu2 %v2037_v40 }
 0x4b3   :  { %672 = vmatpush.msrb.mxu2 %v2043_v41 }
 0x4b4   :  { %1689 = vmatmul.msk.f32.vlgmr.msra.gmra.mxu2 %vm63_vm0, %v374_v12 }
 0x4b5   :  { %786 = vmatpush.msra.mxu2 %v1965_v2 }
 0x4b7   :  { %787 = vmatpush.msra.mxu2 %v1971_v3 }
 0x4b9   :  { %788 = vmatpush.msra.mxu2 %v1979_v5 }
 0x4bb   :  { %789 = vmatpush.msra.mxu2 %v1989_v7 }
 0x515   :  { %v420_v15 = vpop.f32.mrf.mxu3 }
 0x516   :  { %v423_v16 = vadd.f32 %v420_v15, %v112_v14 }
 0x518   :  { %1763 = vtanh.f32 %v423_v16  ;;  %v1687_v26 = vmul.f32 -1.442695, %v423_v16 }
 0x51e   :  { %v1764_v17 = vpop.eup %1763 }
 0x51f   :  { %446 = vrot.lane.b32.xlu1 %v1764_v17, %s1887_s22 }
 0x527   :  { %v491_v21 = vpop.f32.mrf.mxu1 }
 0x528   :  { %v492_v22 = vadd.f32 %v2103_v54, %v491_v21  ;;  %v2230_v21 = vsel %vm282_vm1, %v2118_v51, %v2115_v42 }
 0x52f   :  { %v394_v19 = vpop.f32.mrf.mxu2 }
 0x530   :  { %v395_v20 = vadd.f32 %v2214_v18, %v394_v19 }
 0x532   :  { %397 = vst [vmem:[%s2768_s10] sm:$0xff] %v395_v20 }
 0x537   :  { %v511_v23 = vpop.f32.mrf.mxu2 }
 0x538   :  { %v514_v24 = vadd.f32 %v511_v23, %v492_v22 }
 0x53a   :  { %1765 = vtanh.f32 %v514_v24  ;;  %v1690_v35 = vmul.f32 -1.442695, %v514_v24 }
 0x53b   :  { %1767 = vpow2.f32 %v1687_v26  ;;  %v2239_v26 = vsel %vm212_vm6, %v2121_v55, 0.0 }
 0x540   :  { %v1766_v25 = vpop.eup %1765 }
 0x541   :  { %537 = vrot.lane.b32.xlu0 %v1766_v25, %s1887_s22  ;;  %v1768_v27 = vpop.eup %1767 }
 0x542   :  { %v427_v28 = vadd.f32 1.0, %v1768_v27 }
 0x544   :  { %1769 = vrcp.f32 %v427_v28  ;;  %v439_v43 = vand.u32 2147483648, %v427_v28  ;;  %vm433_vm3 = vweird.f32 %v427_v28  ;;  %v437_v48 = vand.u32 2147483647, %v427_v28 }
 0x545   :  { %1771 = vpow2.f32 %v1690_v35 }
 0x546   :  { %v440_v53 = vor.u32 1.1754944e-38, %v439_v43  ;;  %vm438_vm5 = vcmp.eq.f32.partialorder %v437_v48, 8.507059e+37 }
 0x54a   :  { %v1770_v29 = vpop.eup %1769 }
 0x54b   :  { %v429_v30 = vmul.f32 %v1770_v29, %v427_v28  ;;  %vm434_vm2 = vweird.f32 %v1770_v29  ;;  %v1772_v56 = vpop.eup %1771 }
 0x54c   :  { %vm435_vm4 = vmor %vm433_vm3, %vm434_vm2  ;;  %v518_v60 = vadd.f32 1.0, %v1772_v56 }
 0x54d   :  { %v430_v32 = vsub.f32 1.0, %v429_v30 }
 0x54e   :  { %1773 = vrcp.f32 %v518_v60  ;;  %v530_v13 = vand.u32 2147483648, %v518_v60  ;;  %vm524_vm9 = vweird.f32 %v518_v60  ;;  %v528_v14 = vand.u32 2147483647, %v518_v60 }
 0x54f   :  { %v431_v33 = vmul.f32 %v1770_v29, %v430_v32 }
 0x550   :  { %v531_v16 = vor.u32 1.1754944e-38, %v530_v13  ;;  %vm529_vm11 = vcmp.eq.f32.partialorder %v528_v14, 8.507059e+37 }
 0x551   :  { %v432_v37 = vadd.f32 %v1770_v29, %v431_v33 }
 0x553   :  { %v436_v52 = vsel %vm435_vm4, %v1770_v29, %v432_v37 }
 0x554   :  { %v441_v58 = vsel %vm438_vm5, %v440_v53, %v436_v52  ;;  %v1774_v63 = vpop.eup %1773 }
 0x555   :  { %v520_v1 = vmul.f32 %v1774_v63, %v518_v60  ;;  %vm525_vm8 = vweird.f32 %v1774_v63  ;;  %v444_v22 = vmul.f32 %v441_v58, %v2230_v21 }
 0x556   :  { %vm526_vm10 = vmor %vm524_vm9, %vm525_vm8 }
 0x557   :  { %v521_v9 = vsub.f32 1.0, %v520_v1 }
 0x559   :  { %v522_v11 = vmul.f32 %v1774_v63, %v521_v9 }
 0x55b   :  { %v523_v12 = vadd.f32 %v1774_v63, %v522_v11 }
 0x55d   :  { %v527_v15 = vsel %vm526_vm10, %v1774_v63, %v523_v12 }
 0x55e   :  { %v532_v19 = vsel %vm529_vm11, %v531_v16, %v527_v15 }
 0x55f   :  { %v535_v27 = vmul.f32 %v532_v19, %v2239_v26 }
 0x591   :  { %v447_v57 = vpop.permute.xlu1 %446 }
 0x592   :  { %v449_v59 = vmul.f32 %v447_v57, %v441_v58 }
 0x594   :  { %451 = vrot.lane.b32.xlu0 %v449_v59, %s1888_s23 }
 0x59c   :  { %463 = vperm.xlu0 %1735, %v461_v61  }
 0x5b3   :  { %v538_v17 = vpop.permute.xlu0 %537 }
 0x5b4   :  { %v540_v20 = vmul.f32 %v538_v17, %v532_v19 }
 0x5b6   :  { %542 = vrot.lane.b32.xlu2 %v540_v20, %s1888_s23 }
 0x606   :  { %v452_v23 = vpop.permute.xlu0 %451 }
 0x607   :  { %v2233_v24 = vadd.f32 %v452_v23, %v444_v22 }
 0x609   :  { %1775 = vtanh.f32 %v2233_v24 }
 0x60e   :  { %v2247_v29 = vpop.permute.xlu0 %463 }
 0x60f   :  { %v1776_v25 = vpop.eup %1775  ;;  %vm465_vm12 = vcmp.eq.s32.totalorder %v2247_v29, 1 }
 0x610   :  { %457 = vrot.lane.b32.xlu2 %v1776_v25, %s1887_s22  ;;  %v543_v28 = vpop.permute.xlu2 %542 }
 0x611   :  { %v2243_v42 = vadd.f32 %v543_v28, %v535_v27 }
 0x613   :  { %1777 = vtanh.f32 %v2243_v42 }
 0x619   :  { %v1778_v51 = vpop.eup %1777 }
 0x61a   :  { %548 = vrot.lane.b32.xlu1 %v1778_v51, %s1887_s22 }
 0x66a   :  { %v458_v30 = vpop.permute.xlu2 %457 }
 0x66b   :  { %v460_v32 = vmul.f32 %v458_v30, %v441_v58 }
 0x66d   :  { %v468_v44 = vsel %vm465_vm12, %v460_v32, 0.0  ;;  %v2256_v55 = vsel %vm465_vm12, %v460_v32, %v2134_v62  ;;  %v50_v62 = vld [vmem:[%s2760_s1 + $0x18] sm:$0xff] }
 0x66e   :  { %653 = vrot.lane.b32.xlu2 %v468_v44, %s1888_s23  ;;  %1675 = vmatmul.msk.f32.gmra.mxu0 %vm63_vm0, %v50_v62 }
 0x676   :  { %582 = vrot.lane.b32.xlu2 %v2256_v55, %s1888_s23 }
 0x68c   :  { %v549_v33 = vpop.permute.xlu1 %548 }
 0x68d   :  { %v551_v35 = vmul.f32 %v549_v33, %v532_v19 }
 0x68f   :  { %v554_v37 = vsel %vm282_vm1, %v551_v35, 0.0  ;;  %v2266_v43 = vsel %vm282_vm1, %v551_v35, %v2141_v0 }
 0x690   :  { %556 = vrot.lane.b32.xlu1 %v554_v37, %s1888_s23 }
 0x698   :  { %678 = vrot.lane.b32.xlu1 %v2266_v43, %s1888_s23 }
 0x6c8   :  { %v654_v48 = vpop.permute.xlu2 %653 }
 0x6c9   :  { %1694 = vmatmul.msk.f32.vlgmr.msrb.gmra.mxu2 %vm63_vm0, %v654_v48 }
 0x6ca   :  { %948 = vmatpush.msrb.mxu2 %v2151_v45 }
 0x6cc   :  { %949 = vmatpush.msrb.mxu2 %v2156_v4 }
 0x6ce   :  { %950 = vmatpush.msrb.mxu2 %v2163_v6 }
 0x6d0   :  { %v583_v0 = vpop.permute.xlu2 %582  ;;  %951 = vmatpush.msrb.mxu2 %v2176_v8 }
 0x6d1   :  { %1692 = vmatmul.msk.f32.vlgmr.msrb.gmra.mxu1 %vm63_vm0, %v583_v0 }
 0x6d2   :  { %882 = vmatpush.msrb.mxu1 %v2063_v46 }
 0x6d4   :  { %883 = vmatpush.msrb.mxu1 %v2068_v47 }
 0x6d6   :  { %884 = vmatpush.msrb.mxu1 %v2078_v49 }
 0x6d8   :  { %885 = vmatpush.msrb.mxu1 %v2084_v50 }
 0x6eb   :  { %v114_v56 = vpop.f32.mrf.mxu0 }
 0x6ec   :  { %v115_v57 = vadd.f32 %v2004_v10, %v114_v56 }
 0x702   :  { %v557_v52 = vpop.permute.xlu1 %556 }
 0x703   :  { %1691 = vmatmul.msk.f32.vlgmr.msra.gmra.mxu3 %vm63_vm0, %v557_v52 }
 0x704   :  { %857 = vmatpush.msra.mxu3 %v2026_v38 }
 0x706   :  { %858 = vmatpush.msra.mxu3 %v2031_v39 }
 0x708   :  { %859 = vmatpush.msra.mxu3 %v2037_v40 }
 0x70a   :  { %v679_v53 = vpop.permute.xlu1 %678  ;;  %860 = vmatpush.msra.mxu3 %v2043_v41 }
 0x70b   :  { %1695 = vmatmul.msk.f32.vlgmr.msrb.gmra.mxu3 %vm63_vm0, %v679_v53 }
 0x70c   :  { %974 = vmatpush.msrb.mxu3 %v1965_v2 }
 0x70e   :  { %975 = vmatpush.msrb.mxu3 %v1971_v3 }
 0x710   :  { %976 = vmatpush.msrb.mxu3 %v1979_v5 }
 0x712   :  { %977 = vmatpush.msrb.mxu3 %v1989_v7 }
 0x74c   :  { %v674_v1 = vpop.f32.mrf.mxu2 }
 0x74d   :  { %v675_v9 = vadd.f32 %v2103_v54, %v674_v1  ;;  %v644_v1 = vsel %vm42_vm7, 1, %v1889_v31 }
 0x74e   :  { %v603_v58 = vpop.f32.mrf.mxu1 }
 0x74f   :  { %v606_v59 = vadd.f32 %v603_v58, %v115_v57 }
 0x751   :  { %1779 = vtanh.f32 %v606_v59  ;;  %v1693_v14 = vmul.f32 -1.442695, %v606_v59 }
 0x757   :  { %v1780_v60 = vpop.eup %1779 }
 0x758   :  { %629 = vrot.lane.b32.xlu0 %v1780_v60, %s1887_s22 }
 0x786   :  { %v577_v61 = vpop.f32.mrf.mxu3 }
 0x787   :  { %v578_v63 = vadd.f32 %v2214_v18, %v577_v61 }
 0x789   :  { %580 = vst [vmem:[%s2768_s10 + $0x8] sm:$0xff] %v578_v63 }
 0x78e   :  { %v699_v11 = vpop.f32.mrf.mxu3 }
 0x78f   :  { %v702_v12 = vadd.f32 %v699_v11, %v675_v9  ;;  %v2310_v9 = vsel %vm465_vm12, %v2233_v24, %v2230_v21 }
 0x791   :  { %1781 = vtanh.f32 %v702_v12  ;;  %v1696_v33 = vmul.f32 -1.442695, %v702_v12 }
 0x792   :  { %1783 = vpow2.f32 %v1693_v14 }
 0x797   :  { %v1782_v13 = vpop.eup %1781 }
 0x798   :  { %725 = vrot.lane.b32.xlu1 %v1782_v13, %s1887_s22  ;;  %v1784_v15 = vpop.eup %1783 }
 0x799   :  { %v610_v16 = vadd.f32 1.0, %v1784_v15  ;;  %v2321_v15 = vsel %vm282_vm1, %v2243_v42, %v2239_v26 }
 0x79b   :  { %1785 = vrcp.f32 %v610_v16  ;;  %v622_v25 = vand.u32 2147483648, %v610_v16  ;;  %vm616_vm13 = vweird.f32 %v610_v16  ;;  %v620_v27 = vand.u32 2147483647, %v610_v16 }
 0x79c   :  { %1787 = vpow2.f32 %v1696_v33 }
 0x79d   :  { %v623_v51 = vor.u32 1.1754944e-38, %v622_v25  ;;  %vm621_vm15 = vcmp.eq.f32.partialorder %v620_v27, 8.507059e+37 }
 0x7a1   :  { %v1786_v17 = vpop.eup %1785 }
 0x7a2   :  { %v612_v19 = vmul.f32 %v1786_v17, %v610_v16  ;;  %vm617_vm6 = vweird.f32 %v1786_v17  ;;  %v1788_v35 = vpop.eup %1787 }
 0x7a3   :  { %vm618_vm14 = vmor %vm616_vm13, %vm617_vm6  ;;  %v706_v37 = vadd.f32 1.0, %v1788_v35 }
 0x7a4   :  { %v613_v20 = vsub.f32 1.0, %v612_v19 }
 0x7a5   :  { %1789 = vrcp.f32 %v706_v37  ;;  %v718_v56 = vand.u32 2147483648, %v706_v37  ;;  %vm712_vm3 = vweird.f32 %v706_v37  ;;  %v716_v57 = vand.u32 2147483647, %v706_v37 }
 0x7a6   :  { %v614_v22 = vmul.f32 %v1786_v17, %v613_v20 }
 0x7a7   :  { %v719_v59 = vor.u32 1.1754944e-38, %v718_v56  ;;  %vm717_vm5 = vcmp.eq.f32.partialorder %v716_v57, 8.507059e+37 }
 0x7a8   :  { %v615_v23 = vadd.f32 %v1786_v17, %v614_v22 }
 0x7aa   :  { %v619_v28 = vsel %vm618_vm14, %v1786_v17, %v615_v23 }
 0x7ab   :  { %v624_v32 = vsel %vm621_vm15, %v623_v51, %v619_v28  ;;  %v1790_v62 = vpop.eup %1789 }
 0x7ac   :  { %v708_v48 = vmul.f32 %v1790_v62, %v706_v37  ;;  %vm713_vm2 = vweird.f32 %v1790_v62  ;;  %v627_v11 = vmul.f32 %v624_v32, %v2310_v9 }
 0x7ad   :  { %vm714_vm4 = vmor %vm712_vm3, %vm713_vm2  ;;  %vm43_vm2 = vcmp.gt.s32.totalorder %v2018_v36, 4 }
 0x7ae   :  { %v709_v0 = vsub.f32 1.0, %v708_v48 }
 0x7b0   :  { %v710_v52 = vmul.f32 %v1790_v62, %v709_v0 }
 0x7b2   :  { %v711_v53 = vadd.f32 %v1790_v62, %v710_v52 }
 0x7b4   :  { %v715_v58 = vsel %vm714_vm4, %v1790_v62, %v711_v53 }
 0x7b5   :  { %v720_v61 = vsel %vm717_vm5, %v719_v59, %v715_v58 }
 0x7b6   :  { %v723_v16 = vmul.f32 %v720_v61, %v2321_v15 }
 0x7ca   :  { %v630_v30 = vpop.permute.xlu0 %629 }
 0x7cb   :  { %v632_v44 = vmul.f32 %v630_v30, %v624_v32 }
 0x7cd   :  { %634 = vrot.lane.b32.xlu2 %v632_v44, %s1888_s23 }
 0x80a   :  { %v726_v60 = vpop.permute.xlu1 %725 }
 0x80b   :  { %v728_v63 = vmul.f32 %v726_v60, %v720_v61 }
 0x80d   :  { %730 = vrot.lane.b32.xlu0 %v728_v63, %s1888_s23 }
 0x815   :  { %646 = vperm.xlu0 %1735, %v644_v1  }
 0x827   :  { %v635_v12 = vpop.permute.xlu2 %634 }
 0x828   :  { %v2313_v13 = vadd.f32 %v635_v12, %v627_v11 }
 0x82a   :  { %1791 = vtanh.f32 %v2313_v13 }
 0x830   :  { %v1792_v14 = vpop.eup %1791 }
 0x831   :  { %640 = vrot.lane.b32.xlu1 %v1792_v14, %s1887_s22 }
 0x87f   :  { %v731_v21 = vpop.permute.xlu0 %730 }
 0x880   :  { %v2324_v24 = vadd.f32 %v731_v21, %v723_v16 }
 0x882   :  { %1793 = vtanh.f32 %v2324_v24 }
 0x887   :  { %v2328_v19 = vpop.permute.xlu0 %646 }
 0x888   :  { %v1794_v17 = vpop.eup %1793  ;;  %vm648_vm8 = vcmp.eq.s32.totalorder %v2328_v19, 1 }
 0x889   :  { %736 = vrot.lane.b32.xlu2 %v1794_v17, %s1887_s22  ;;  %v2401_v36 = vsel %vm648_vm8, %v2313_v13, %v2310_v9 }
 0x8a3   :  { %v641_v20 = vpop.permute.xlu1 %640 }
 0x8a4   :  { %v643_v22 = vmul.f32 %v641_v20, %v624_v32 }
 0x8a6   :  { %v651_v34 = vsel %vm648_vm8, %v643_v22, 0.0  ;;  %v2347_v27 = vsel %vm648_vm8, %v643_v22, %v2256_v55 }
 0x8a7   :  { %841 = vrot.lane.b32.xlu2 %v651_v34, %s1888_s23 }
 0x8e3   :  { %v737_v26 = vpop.permute.xlu2 %736 }
 0x8e4   :  { %v739_v42 = vmul.f32 %v737_v26, %v720_v61 }
 0x8e6   :  { %v2337_v23 = vsel %vm465_vm12, %v739_v42, %v2266_v43  ;;  %v742_v25 = vsel %vm465_vm12, %v739_v42, 0.0  ;;  %v51_v43 = vld [vmem:[%s2760_s1 + $0x20] sm:$0xff] }
 0x8e7   :  { %866 = vrot.lane.b32.xlu0 %v2337_v23, %s1888_s23  ;;  %744 = vrot.lane.b32.xlu1 %v742_v25, %s1888_s23  ;;  %v832_v25 = vsel %vm43_vm2, 1, %v1889_v31 }
 0x8e8   :  { %1676 = vmatmul.msk.f32.gmra.mxu0 %vm63_vm0, %v51_v43 }
 0x8ef   :  { %770 = vrot.lane.b32.xlu1 %v2347_v27, %s1888_s23 }
 0x901   :  { %v842_v28 = vpop.permute.xlu2 %841 }
 0x902   :  { %1700 = vmatmul.msk.f32.vlgmr.msra.gmra.mxu3 %vm63_vm0, %v842_v28  ;;  %v2391_v28 = vsel %vm465_vm12, %v2324_v24, %v2321_v15 }
 0x903   :  { %1136 = vmatpush.msra.mxu3 %v2151_v45 }
 0x905   :  { %1137 = vmatpush.msra.mxu3 %v2156_v4 }
 0x907   :  { %1138 = vmatpush.msra.mxu3 %v2163_v6 }
 0x909   :  { %1139 = vmatpush.msra.mxu3 %v2176_v8 }
 0x959   :  { %v745_v55 = vpop.permute.xlu1 %744  ;;  %v867_v45 = vpop.permute.xlu0 %866 }
 0x95a   :  { %1697 = vmatmul.msk.f32.vlgmr.msra.gmra.mxu1 %vm63_vm0, %v745_v55 }
 0x95b   :  { %1045 = vmatpush.msra.mxu1 %v2026_v38 }
 0x95d   :  { %1046 = vmatpush.msra.mxu1 %v2031_v39 }
 0x95f   :  { %1047 = vmatpush.msra.mxu1 %v2037_v40 }
 0x961   :  { %v771_v4 = vpop.permute.xlu1 %770  ;;  %1048 = vmatpush.msra.mxu1 %v2043_v41 }
 0x962   :  { %1698 = vmatmul.msk.f32.vlgmr.msra.gmra.mxu2 %vm63_vm0, %v771_v4  ;;  %1701 = vmatmul.msk.f32.vlgmr.msrb.gmra.mxu1 %vm63_vm0, %v867_v45 }
 0x963   :  { %1070 = vmatpush.msra.mxu2 %v2063_v46  ;;  %1162 = vmatpush.msrb.mxu1 %v1965_v2 }
 0x965   :  { %1071 = vmatpush.msra.mxu2 %v2068_v47  ;;  %1163 = vmatpush.msrb.mxu1 %v1971_v3  ;;  %v117_v3 = vpop.f32.mrf.mxu0 }
 0x967   :  { %1072 = vmatpush.msra.mxu2 %v2078_v49  ;;  %1164 = vmatpush.msrb.mxu1 %v1979_v5  ;;  %v118_v5 = vadd.f32 %v2004_v10, %v117_v3 }
 0x969   :  { %1073 = vmatpush.msra.mxu2 %v2084_v50  ;;  %1165 = vmatpush.msrb.mxu1 %v1989_v7 }
 0x985   :  { %v862_v2 = vpop.f32.mrf.mxu3 }
 0x986   :  { %v863_v40 = vadd.f32 %v2103_v54, %v862_v2 }
 0x9d7   :  { %v765_v38 = vpop.f32.mrf.mxu1 }
 0x9d8   :  { %v766_v39 = vadd.f32 %v2214_v18, %v765_v38 }
 0x9da   :  { %768 = vst [vmem:[%s2768_s10 + $0x10] sm:$0xff] %v766_v39 }
 0x9df   :  { %v887_v41 = vpop.f32.mrf.mxu1 }
 0x9e0   :  { %v890_v47 = vadd.f32 %v887_v41, %v863_v40 }
 0x9e2   :  { %1795 = vtanh.f32 %v890_v47  ;;  %v1702_v32 = vmul.f32 -1.442695, %v890_v47 }
 0x9e5   :  { %v791_v6 = vpop.f32.mrf.mxu2 }
 0x9e6   :  { %v794_v51 = vadd.f32 %v791_v6, %v118_v5  ;;  %v52_v5 = vld [vmem:[%s2760_s1 + $0x28] sm:$0xff] }
 0x9e7   :  { %1677 = vmatmul.msk.f32.gmra.mxu0 %vm63_vm0, %v52_v5 }
 0x9e8   :  { %v1796_v30 = vpop.eup %1795  ;;  %1797 = vtanh.f32 %v794_v51  ;;  %v1699_v62 = vmul.f32 -1.442695, %v794_v51  ;;  %v1867_v51 = vld [vmem:[%s2759_s3 + $0x18] sm:$0xff] }
 0x9e9   :  { %913 = vrot.lane.b32.xlu2 %v1796_v30, %s1887_s22  ;;  %1799 = vpow2.f32 %v1702_v32  ;;  %v1869_v30 = vld [vmem:[%s2759_s3 + $0x8] sm:$0xff] }
 0x9ee   :  { %v1798_v7 = vpop.eup %1797 }
 0x9ef   :  { %817 = vrot.lane.b32.xlu0 %v1798_v7, %s1887_s22  ;;  %v1800_v44 = vpop.eup %1799  ;;  %v1870_v7 = vld [vmem:[%s2759_s3] sm:$0xff] }
 0x9f0   :  { %v894_v33 = vadd.f32 1.0, %v1800_v44  ;;  %v2453_v44 = vld [vmem:[%s2763_s5 + $0x18] sm:$0xff] }
 0x9f2   :  { %1801 = vrcp.f32 %v894_v33  ;;  %v906_v52 = vand.u32 2147483648, %v894_v33  ;;  %vm900_vm9 = vweird.f32 %v894_v33  ;;  %v904_v56 = vand.u32 2147483647, %v894_v33 }
 0x9f3   :  { %1803 = vpow2.f32 %v1699_v62 }
 0x9f4   :  { %v907_v59 = vor.u32 1.1754944e-38, %v906_v52  ;;  %vm905_vm11 = vcmp.eq.f32.partialorder %v904_v56, 8.507059e+37  ;;  %v2496_v56 = vld [vmem:[%s2761_s4] ss:$0 sm:$0xff] }
 0x9f8   :  { %v1802_v35 = vpop.eup %1801 }
 0x9f9   :  { %v896_v37 = vmul.f32 %v1802_v35, %v894_v33  ;;  %vm901_vm1 = vweird.f32 %v1802_v35  ;;  %v1804_v53 = vpop.eup %1803  ;;  %v2459_v33 = vld [vmem:[%s2763_s5 + $0x10] sm:$0xff] }
 0x9fa   :  { %vm902_vm10 = vmor %vm900_vm9, %vm901_vm1  ;;  %v798_v58 = vadd.f32 1.0, %v1804_v53 }
 0x9fb   :  { %v897_v48 = vsub.f32 1.0, %v896_v37 }
 0x9fc   :  { %1805 = vrcp.f32 %v798_v58  ;;  %v810_v21 = vand.u32 2147483648, %v798_v58  ;;  %vm804_vm13 = vweird.f32 %v798_v58  ;;  %v808_v17 = vand.u32 2147483647, %v798_v58 }
 0x9fd   :  { %v898_v10 = vmul.f32 %v1802_v35, %v897_v48  ;;  %v2471_v48 = vld [vmem:[%s2763_s5] sm:$0xff] }
 0x9fe   :  { %v811_v22 = vor.u32 1.1754944e-38, %v810_v21  ;;  %vm809_vm15 = vcmp.eq.f32.partialorder %v808_v17, 8.507059e+37 }
 0x9ff   :  { %v899_v0 = vadd.f32 %v1802_v35, %v898_v10  ;;  %v2481_v10 = vld [vmem:[%s2764_s6 + $0x10] sm:$0xff] }
 0xa01   :  { %v903_v57 = vsel %vm902_vm10, %v1802_v35, %v899_v0  ;;  %v2465_v35 = vld [vmem:[%s2763_s5 + $0x8] sm:$0xff] }
 0xa02   :  { %v908_v61 = vsel %vm905_vm11, %v907_v59, %v903_v57  ;;  %v1806_v1 = vpop.eup %1805 }
 0xa03   :  { %v800_v11 = vmul.f32 %v1806_v1, %v798_v58  ;;  %vm805_vm6 = vweird.f32 %v1806_v1  ;;  %v911_v43 = vmul.f32 %v908_v61, %v2391_v28 }
 0xa04   :  { %vm806_vm14 = vmor %vm804_vm13, %vm805_vm6 }
 0xa05   :  { %v801_v12 = vsub.f32 1.0, %v800_v11 }
 0xa07   :  { %v802_v14 = vmul.f32 %v1806_v1, %v801_v12 }
 0xa09   :  { %v803_v16 = vadd.f32 %v1806_v1, %v802_v14 }
 0xa0b   :  { %v807_v20 = vsel %vm806_vm14, %v1806_v1, %v803_v16 }
 0xa0c   :  { %v812_v26 = vsel %vm809_vm15, %v811_v22, %v807_v20 }
 0xa0d   :  { %v815_v4 = vmul.f32 %v812_v26, %v2401_v36 }
 0xa43   :  { %v914_v60 = vpop.permute.xlu2 %913 }
 0xa44   :  { %v916_v63 = vmul.f32 %v914_v60, %v908_v61 }
 0xa46   :  { %918 = vrot.lane.b32.xlu1 %v916_v63, %s1888_s23 }
 0xa61   :  { %v818_v34 = vpop.permute.xlu0 %817 }
 0xa62   :  { %v820_v42 = vmul.f32 %v818_v34, %v812_v26 }
 0xa64   :  { %822 = vrot.lane.b32.xlu2 %v820_v42, %s1888_s23  ;;  %v120_v52 = vpop.f32.mrf.mxu0 }
 0xa6c   :  { %834 = vperm.xlu2 %1734, %v832_v25  }
 0xab8   :  { %v919_v55 = vpop.permute.xlu1 %918 }
 0xab9   :  { %v2394_v45 = vadd.f32 %v919_v55, %v911_v43 }
 0xabb   :  { %1807 = vtanh.f32 %v2394_v45 }
 0xabe   :  { %v823_v38 = vpop.permute.xlu2 %822 }
 0xabf   :  { %v2404_v39 = vadd.f32 %v823_v38, %v815_v4 }
 0xac1   :  { %v1808_v29 = vpop.eup %1807  ;;  %1809 = vtanh.f32 %v2404_v39 }
 0xac2   :  { %924 = vrot.lane.b32.xlu0 %v1808_v29, %s1887_s22 }
 0xac6   :  { %v2419_v13 = vpop.permute.xlu2 %834 }
 0xac7   :  { %v1810_v15 = vpop.eup %1809  ;;  %vm836_vm12 = vcmp.eq.s32.totalorder %v2419_v13, 1 }
 0xac8   :  { %828 = vrot.lane.b32.xlu1 %v1810_v15, %s1887_s22  ;;  %v2506_v15 = vld [vmem:[%s2762_s0] sm:$0xff] }
 0xac9   :  { %vm44_vm1 = vcmp.gt.s32.totalorder %v2506_v15, 5 }
 0xb34   :  { %v925_v24 = vpop.permute.xlu0 %924 }
 0xb35   :  { %v927_v2 = vmul.f32 %v925_v24, %v908_v61 }
 0xb37   :  { %v930_v40 = vsel %vm648_vm8, %v927_v2, 0.0  ;;  %v2414_v9 = vsel %vm648_vm8, %v927_v2, %v2337_v23  ;;  %v1020_v2 = vsel %vm44_vm1, 1, %v1889_v31 }
 0xb38   :  { %932 = vrot.lane.b32.xlu0 %v930_v40, %s1888_s23  ;;  %1054 = vrot.lane.b32.xlu1 %v2414_v9, %s1888_s23 }
 0xb3a   :  { %v829_v41 = vpop.permute.xlu1 %828 }
 0xb3b   :  { %v831_v3 = vmul.f32 %v829_v41, %v812_v26 }
 0xb3d   :  { %v839_v47 = vsel %vm836_vm12, %v831_v3, 0.0  ;;  %v2428_v23 = vsel %vm836_vm12, %v831_v3, %v2347_v27  ;;  %v1868_v27 = vld [vmem:[%s2759_s3 + $0x10] sm:$0xff] }
 0xb3e   :  { %1029 = vrot.lane.b32.xlu2 %v839_v47, %s1888_s23 }
 0xb40   :  { %958 = vrot.lane.b32.xlu0 %v2428_v23, %s1888_s23 }
 0xb98   :  { %v1030_v6 = vpop.permute.xlu2 %1029 }
 0xb99   :  { %1706 = vmatmul.msk.f32.vlgmr.msra.gmra.mxu1 %vm63_vm0, %v1030_v6 }
 0xb9a   :  { %1350 = vmatpush.msra.mxu1 %v1867_v51 }
 0xb9c   :  { %1351 = vmatpush.msra.mxu1 %v1868_v27 }
 0xb9e   :  { %1352 = vmatpush.msra.mxu1 %v1869_v30 }
 0xba0   :  { %1353 = vmatpush.msra.mxu1 %v1870_v7 }
 0xbaa   :  { %v933_v32 = vpop.permute.xlu0 %932  ;;  %v1055_v37 = vpop.permute.xlu1 %1054 }
 0xbab   :  { %1703 = vmatmul.msk.f32.vlgmr.msrb.gmra.mxu2 %vm63_vm0, %v933_v32  ;;  %v2515_v32 = vsel %vm836_vm12, %v2404_v39, %v2401_v36 }
 0xbac   :  { %1233 = vmatpush.msrb.mxu2 %v2453_v44 }
 0xbae   :  { %1234 = vmatpush.msrb.mxu2 %v2459_v33 }
 0xbb0   :  { %1235 = vmatpush.msrb.mxu2 %v2465_v35 }
 0xbb2   :  { %v959_v62 = vpop.permute.xlu0 %958  ;;  %1236 = vmatpush.msrb.mxu2 %v2471_v48 }
 0xbb3   :  { %1704 = vmatmul.msk.f32.vlgmr.msrb.gmra.mxu3 %vm63_vm0, %v959_v62  ;;  %1707 = vmatmul.msk.f32.vlgmr.msra.gmra.mxu2 %vm63_vm0, %v1055_v37 }
 0xbb4   :  { %1258 = vmatpush.msrb.mxu3 %v2063_v46  ;;  %1421 = vmatpush.msra.mxu2 %v2453_v44 }
 0xbb6   :  { %1259 = vmatpush.msrb.mxu3 %v2481_v10  ;;  %1422 = vmatpush.msra.mxu2 %v2459_v33 }
 0xbb8   :  { %1260 = vmatpush.msrb.mxu3 %v2078_v49  ;;  %1423 = vmatpush.msra.mxu2 %v2465_v35  ;;  %v121_v49 = vadd.f32 %v2496_v56, %v120_v52  ;;  %v2526_v52 = vsel %vm648_vm8, %v2394_v45, %v2391_v28 }
 0xbba   :  { %1261 = vmatpush.msrb.mxu3 %v2084_v50  ;;  %1424 = vmatpush.msra.mxu2 %v2471_v48 }
 0xc16   :  { %v1050_v53 = vpop.f32.mrf.mxu1 }
 0xc17   :  { %v1051_v50 = vadd.f32 %v2103_v54, %v1050_v53 }
 0xc2e   :  { %v953_v46 = vpop.f32.mrf.mxu2 }
 0xc2f   :  { %v954_v0 = vadd.f32 %v2214_v18, %v953_v46 }
 0xc31   :  { %956 = vst [vmem:[%s2768_s10 + $0x18] sm:$0xff] %v954_v0 }
 0xc36   :  { %v979_v57 = vpop.f32.mrf.mxu3  ;;  %v1075_v58 = vpop.f32.mrf.mxu2 }
 0xc37   :  { %v982_v59 = vadd.f32 %v979_v57, %v121_v49  ;;  %v1078_v60 = vadd.f32 %v1075_v58, %v1051_v50 }
 0xc39   :  { %1811 = vtanh.f32 %v982_v59  ;;  %v1705_v1 = vmul.f32 -1.442695, %v982_v59  ;;  %v1708_v16 = vmul.f32 -1.442695, %v1078_v60 }
 0xc3a   :  { %1813 = vtanh.f32 %v1078_v60 }
 0xc3b   :  { %1815 = vpow2.f32 %v1705_v1  ;;  %v1878_v1 = vld [vmem:[%s2764_s6 + $0x18] sm:$0xff] }
 0xc3f   :  { %v1812_v61 = vpop.eup %1811 }
 0xc40   :  { %v1814_v63 = vpop.eup %1813  ;;  %1005 = vrot.lane.b32.xlu2 %v1812_v61, %s1887_s22 }
 0xc41   :  { %1101 = vrot.lane.b32.xlu1 %v1814_v63, %s1887_s22  ;;  %v1816_v11 = vpop.eup %1815  ;;  %v53_v63 = vld [vmem:[%s2760_s1 + $0x30] sm:$0xff] }
 0xc42   :  { %v986_v12 = vadd.f32 1.0, %v1816_v11  ;;  %1678 = vmatmul.msk.f32.gmra.mxu0 %vm63_vm0, %v53_v63 }
 0xc44   :  { %1817 = vrcp.f32 %v986_v12  ;;  %v998_v26 = vand.u32 2147483648, %v986_v12  ;;  %vm992_vm4 = vweird.f32 %v986_v12  ;;  %v996_v42 = vand.u32 2147483647, %v986_v12 }
 0xc45   :  { %1819 = vpow2.f32 %v1708_v16 }
 0xc46   :  { %v999_v43 = vor.u32 1.1754944e-38, %v998_v26  ;;  %vm997_vm7 = vcmp.eq.f32.partialorder %v996_v42, 8.507059e+37 }
 0xc4a   :  { %v1818_v14 = vpop.eup %1817 }
 0xc4b   :  { %v988_v54 = vmul.f32 %v1818_v14, %v986_v12  ;;  %v1820_v20 = vpop.eup %1819  ;;  %vm993_vm3 = vweird.f32 %v1818_v14  ;;  %v1880_v12 = vld [vmem:[%s2764_s6] sm:$0xff] }
 0xc4c   :  { %v1082_v22 = vadd.f32 1.0, %v1820_v20  ;;  %vm994_vm5 = vmor %vm992_vm4, %vm993_vm3  ;;  %vm45_vm3 = vcmp.gt.s32.totalorder %v2506_v15, 6 }
 0xc4d   :  { %v989_v21 = vsub.f32 1.0, %v988_v54  ;;  %v1881_v54 = vld [vmem:[%s2766_s8 + $0x18] sm:$0xff] }
 0xc4e   :  { %1821 = vrcp.f32 %v1082_v22  ;;  %v1094_v47 = vand.u32 2147483648, %v1082_v22  ;;  %vm1088_vm10 = vweird.f32 %v1082_v22  ;;  %v1092_v5 = vand.u32 2147483647, %v1082_v22 }
 0xc4f   :  { %v990_v17 = vmul.f32 %v1818_v14, %v989_v21 }
 0xc50   :  { %v1095_v51 = vor.u32 1.1754944e-38, %v1094_v47  ;;  %vm1093_vm6 = vcmp.eq.f32.partialorder %v1092_v5, 8.507059e+37 }
 0xc51   :  { %v991_v34 = vadd.f32 %v1818_v14, %v990_v17 }
 0xc53   :  { %v995_v25 = vsel %vm994_vm5, %v1818_v14, %v991_v34 }
 0xc54   :  { %v1000_v4 = vsel %vm997_vm7, %v999_v43, %v995_v25  ;;  %v1822_v29 = vpop.eup %1821 }
 0xc55   :  { %v1084_v24 = vmul.f32 %v1822_v29, %v1082_v22  ;;  %vm1089_vm9 = vweird.f32 %v1822_v29  ;;  %v1003_v37 = vmul.f32 %v1000_v4, %v2515_v32 }
 0xc56   :  { %vm1090_vm11 = vmor %vm1088_vm10, %vm1089_vm9 }
 0xc57   :  { %v1085_v40 = vsub.f32 1.0, %v1084_v24 }
 0xc59   :  { %v1086_v41 = vmul.f32 %v1822_v29, %v1085_v40 }
 0xc5b   :  { %v1087_v3 = vadd.f32 %v1822_v29, %v1086_v41 }
 0xc5d   :  { %v1091_v6 = vsel %vm1090_vm11, %v1822_v29, %v1087_v3 }
 0xc5e   :  { %v1096_v30 = vsel %vm1093_vm6, %v1095_v51, %v1091_v6 }
 0xc5f   :  { %v1099_v53 = vmul.f32 %v1096_v30, %v2526_v52 }
 0xc9a   :  { %v1006_v55 = vpop.permute.xlu2 %1005 }
 0xc9b   :  { %v1008_v38 = vmul.f32 %v1006_v55, %v1000_v4 }
 0xc9d   :  { %1010 = vrot.lane.b32.xlu1 %v1008_v38, %s1888_s23 }
 0xca5   :  { %1022 = vperm.xlu1 %1733, %v1020_v2  }
 0xcb3   :  { %v1102_v27 = vpop.permute.xlu1 %1101 }
 0xcb4   :  { %v1104_v7 = vmul.f32 %v1102_v27, %v1096_v30 }
 0xcb6   :  { %1106 = vrot.lane.b32.xlu0 %v1104_v7, %s1888_s23 }
 0xd0f   :  { %v1011_v62 = vpop.permute.xlu1 %1010 }
 0xd10   :  { %v2518_v46 = vadd.f32 %v1011_v62, %v1003_v37 }
 0xd12   :  { %1823 = vtanh.f32 %v2518_v46 }
 0xd17   :  { %v2533_v50 = vpop.permute.xlu1 %1022 }
 0xd18   :  { %v1824_v0 = vpop.eup %1823  ;;  %vm1024_vm13 = vcmp.eq.s32.totalorder %v2533_v50, 1 }
 0xd19   :  { %1016 = vrot.lane.b32.xlu0 %v1824_v0, %s1887_s22 }
 0xd28   :  { %v1107_v36 = vpop.permute.xlu0 %1106 }
 0xd29   :  { %v2529_v39 = vadd.f32 %v1107_v36, %v1099_v53  ;;  %v1208_v53 = vsel %vm45_vm3, 1, %v1889_v31 }
 0xd2b   :  { %1825 = vtanh.f32 %v2529_v39 }
 0xd31   :  { %v1826_v49 = vpop.eup %1825 }
 0xd32   :  { %1112 = vrot.lane.b32.xlu2 %v1826_v49, %s1887_s22 }
 0xd8b   :  { %v1017_v57 = vpop.permute.xlu0 %1016 }
 0xd8c   :  { %v1019_v58 = vmul.f32 %v1017_v57, %v1000_v4  ;;  %v1113_v59 = vpop.permute.xlu2 %1112 }
 0xd8d   :  { %v1115_v19 = vmul.f32 %v1113_v59, %v1096_v30 }
 0xd8e   :  { %v1027_v28 = vsel %vm1024_vm13, %v1019_v58, 0.0  ;;  %v2552_v61 = vsel %vm1024_vm13, %v1019_v58, %v2428_v23  ;;  %v1879_v23 = vld [vmem:[%s2764_s6 + $0x8] sm:$0xff] }
 0xd8f   :  { %1217 = vrot.lane.b32.xlu0 %v1027_v28, %s1888_s23  ;;  %v1118_v45 = vsel %vm836_vm12, %v1115_v19, 0.0  ;;  %v2544_v60 = vsel %vm836_vm12, %v1115_v19, %v2414_v9 }
 0xd90   :  { %1120 = vrot.lane.b32.xlu2 %v1118_v45, %s1888_s23  ;;  %1242 = vrot.lane.b32.xlu1 %v2544_v60, %s1888_s23 }
 0xd98   :  { %1146 = vrot.lane.b32.xlu2 %v2552_v61, %s1888_s23 }
 0xdea   :  { %v1121_v9 = vpop.permute.xlu2 %1120 }
 0xdeb   :  { %1709 = vmatmul.msk.f32.vlgmr.msra.gmra.mxu3 %vm63_vm0, %v1121_v9 }
 0xdec   :  { %1446 = vmatpush.msra.mxu3 %v1878_v1 }
 0xdee   :  { %1447 = vmatpush.msra.mxu3 %v2481_v10 }
 0xdf0   :  { %1448 = vmatpush.msra.mxu3 %v1879_v23 }
 0xdf2   :  { %v1147_v11 = vpop.permute.xlu2 %1146  ;;  %1449 = vmatpush.msra.mxu3 %v1880_v12 }
 0xdf3   :  { %1710 = vmatmul.msk.f32.vlgmr.msrb.gmra.mxu1 %vm63_vm0, %v1147_v11 }
 0xdf4   :  { %1538 = vmatpush.msrb.mxu1 %v2453_v44  ;;  %v1882_v44 = vld [vmem:[%s2766_s8 + $0x10] sm:$0xff] }
 0xdf6   :  { %1539 = vmatpush.msrb.mxu1 %v2459_v33  ;;  %v1883_v33 = vld [vmem:[%s2766_s8 + $0x8] sm:$0xff] }
 0xdf8   :  { %1540 = vmatpush.msrb.mxu1 %v2465_v35  ;;  %v123_v35 = vpop.f32.mrf.mxu0 }
 0xdfa   :  { %1541 = vmatpush.msrb.mxu1 %v2471_v48  ;;  %v124_v48 = vadd.f32 %v2496_v56, %v123_v35 }
 0xe01   :  { %v1218_v14 = vpop.permute.xlu0 %1217 }
 0xe02   :  { %v1243_v16 = vpop.permute.xlu1 %1242  ;;  %1712 = vmatmul.msk.f32.vlgmr.msrb.gmra.mxu2 %vm63_vm0, %v1218_v14 }
 0xe03   :  { %1713 = vmatmul.msk.f32.vlgmr.msrb.gmra.mxu3 %vm63_vm0, %v1243_v16  ;;  %1563 = vmatpush.msrb.mxu2 %v1878_v1  ;;  %v2610_v1 = vsel %vm1024_vm13, %v2518_v46, %v2515_v32  ;;  %v2621_v16 = vsel %vm836_vm12, %v2529_v39, %v2526_v52  ;;  %v54_v39 = vld [vmem:[%s2760_s1 + $0x38] sm:$0xff] }
 0xe04   :  { %1629 = vmatpush.msrb.mxu3 %v1881_v54  ;;  %1679 = vmatmul.msk.f32.gmra.mxu0 %vm63_vm0, %v54_v39 }
 0xe05   :  { %1564 = vmatpush.msrb.mxu2 %v2481_v10 }
 0xe06   :  { %1630 = vmatpush.msrb.mxu3 %v1882_v44 }
 0xe07   :  { %1565 = vmatpush.msrb.mxu2 %v1879_v23 }
 0xe08   :  { %1631 = vmatpush.msrb.mxu3 %v1883_v33 }
 0xe09   :  { %1566 = vmatpush.msrb.mxu2 %v1880_v12 }
 0xe0a   :  { %1632 = vmatpush.msrb.mxu3 %v2176_v8  ;;  %v2598_v8 = vld [vmem:[%s2765_s7] ss:$0 sm:$0xff] }
 0xe6e   :  { %v1141_v21 = vpop.f32.mrf.mxu3 }
 0xe6f   :  { %v1142_v10 = vadd.f32 %v2214_v18, %v1141_v21 }
 0xe70   :  { %v1167_v17 = vpop.f32.mrf.mxu1 }
 0xe71   :  { %1144 = vst [vmem:[%s2768_s10 + $0x20] sm:$0xff] %v1142_v10  ;;  %v1170_v20 = vadd.f32 %v1167_v17, %v124_v48 }
 0xe73   :  { %1827 = vtanh.f32 %v1170_v20  ;;  %v1711_v43 = vmul.f32 -1.442695, %v1170_v20 }
 0xe79   :  { %v1828_v22 = vpop.eup %1827 }
 0xe7a   :  { %1193 = vrot.lane.b32.xlu0 %v1828_v22, %s1887_s22 }
 0xe85   :  { %v1238_v34 = vpop.f32.mrf.mxu2 }
 0xe86   :  { %v1239_v26 = vadd.f32 %v2598_v8, %v1238_v34  ;;  %v1263_v42 = vpop.f32.mrf.mxu3  ;;  %v126_v34 = vpop.f32.mrf.mxu0 }
 0xe88   :  { %v1266_v18 = vadd.f32 %v1263_v42, %v1239_v26  ;;  %v127_v26 = vadd.f32 %v2496_v56, %v126_v34 }
 0xe8a   :  { %1829 = vtanh.f32 %v1266_v18  ;;  %v1714_v29 = vmul.f32 -1.442695, %v1266_v18 }
 0xe8b   :  { %1831 = vpow2.f32 %v1711_v43 }
 0xe90   :  { %v1830_v25 = vpop.eup %1829 }
 0xe91   :  { %1289 = vrot.lane.b32.xlu1 %v1830_v25, %s1887_s22  ;;  %v1832_v55 = vpop.eup %1831 }
 0xe92   :  { %v1174_v4 = vadd.f32 1.0, %v1832_v55 }
 0xe94   :  { %1833 = vrcp.f32 %v1174_v4  ;;  %v1186_v5 = vand.u32 2147483648, %v1174_v4  ;;  %vm1180_vm14 = vweird.f32 %v1174_v4  ;;  %v1184_v6 = vand.u32 2147483647, %v1174_v4 }
 0xe95   :  { %1835 = vpow2.f32 %v1714_v29 }
 0xe96   :  { %v1187_v27 = vor.u32 1.1754944e-38, %v1186_v5  ;;  %vm1185_vm2 = vcmp.eq.f32.partialorder %v1184_v6, 8.507059e+37 }
 0xe9a   :  { %v1834_v38 = vpop.eup %1833 }
 0xe9b   :  { %v1176_v24 = vmul.f32 %v1834_v38, %v1174_v4  ;;  %v1836_v40 = vpop.eup %1835  ;;  %vm1181_vm8 = vweird.f32 %v1834_v38 }
 0xe9c   :  { %v1270_v3 = vadd.f32 1.0, %v1836_v40  ;;  %vm1182_vm15 = vmor %vm1180_vm14, %vm1181_vm8  ;;  %vm46_vm8 = vcmp.gt.s32.totalorder %v2506_v15, 7 }
 0xe9d   :  { %v1177_v2 = vsub.f32 1.0, %v1176_v24 }
 0xe9e   :  { %1837 = vrcp.f32 %v1270_v3  ;;  %v1282_v58 = vand.u32 2147483648, %v1270_v3  ;;  %vm1276_vm5 = vweird.f32 %v1270_v3  ;;  %v1280_v59 = vand.u32 2147483647, %v1270_v3 }
 0xe9f   :  { %v1178_v41 = vmul.f32 %v1834_v38, %v1177_v2 }
 0xea0   :  { %v1283_v28 = vor.u32 1.1754944e-38, %v1282_v58  ;;  %vm1281_vm1 = vcmp.eq.f32.partialorder %v1280_v59, 8.507059e+37 }
 0xea1   :  { %v1179_v47 = vadd.f32 %v1834_v38, %v1178_v41 }
 0xea3   :  { %v1183_v51 = vsel %vm1182_vm15, %v1834_v38, %v1179_v47 }
 0xea4   :  { %v1188_v7 = vsel %vm1185_vm2, %v1187_v27, %v1183_v51  ;;  %v1838_v37 = vpop.eup %1837 }
 0xea5   :  { %v1272_v0 = vmul.f32 %v1838_v37, %v1270_v3  ;;  %vm1277_vm4 = vweird.f32 %v1838_v37  ;;  %v1191_v23 = vmul.f32 %v1188_v7, %v2610_v1 }
 0xea6   :  { %vm1278_vm7 = vmor %vm1276_vm5, %vm1277_vm4 }
 0xea7   :  { %v1273_v36 = vsub.f32 1.0, %v1272_v0  ;;  %v1396_v0 = vsel %vm46_vm8, 1, %v1889_v31 }
 0xea9   :  { %v1274_v49 = vmul.f32 %v1838_v37, %v1273_v36 }
 0xeab   :  { %v1275_v57 = vadd.f32 %v1838_v37, %v1274_v49 }
 0xead   :  { %v1279_v19 = vsel %vm1278_vm7, %v1838_v37, %v1275_v57 }
 0xeae   :  { %v1284_v63 = vsel %vm1281_vm1, %v1283_v28, %v1279_v19 }
 0xeaf   :  { %v1287_v54 = vmul.f32 %v1284_v63, %v2621_v16 }
 0xeec   :  { %v1194_v30 = vpop.permute.xlu0 %1193 }
 0xeed   :  { %v1196_v62 = vmul.f32 %v1194_v30, %v1188_v7 }
 0xeef   :  { %1198 = vrot.lane.b32.xlu2 %v1196_v62, %s1888_s23 }
 0xef7   :  { %1210 = vperm.xlu2 %1734, %v1208_v53  }
 0xf03   :  { %v1290_v45 = vpop.permute.xlu1 %1289 }
 0xf04   :  { %v1292_v9 = vmul.f32 %v1290_v45, %v1284_v63 }
 0xf06   :  { %1294 = vrot.lane.b32.xlu0 %v1292_v9, %s1888_s23 }
 0xf49   :  { %v1199_v11 = vpop.permute.xlu2 %1198 }
 0xf4a   :  { %v2613_v12 = vadd.f32 %v1199_v11, %v1191_v23 }
 0xf4c   :  { %1839 = vtanh.f32 %v2613_v12 }
 0xf51   :  { %v2628_v33 = vpop.permute.xlu2 %1210 }
 0xf52   :  { %v1840_v14 = vpop.eup %1839  ;;  %vm1212_vm9 = vcmp.eq.s32.totalorder %v2628_v33, 1 }
 0xf53   :  { %1204 = vrot.lane.b32.xlu1 %v1840_v14, %s1887_s22  ;;  %v2670_v11 = vsel %vm1212_vm9, %v2613_v12, %v2610_v1 }
 0xf78   :  { %v1295_v32 = vpop.permute.xlu0 %1294 }
 0xf79   :  { %v2624_v46 = vadd.f32 %v1295_v32, %v1287_v54 }
 0xf7b   :  { %1841 = vtanh.f32 %v2624_v46 }
 0xf81   :  { %v1842_v44 = vpop.eup %1841 }
 0xf82   :  { %1300 = vrot.lane.b32.xlu0 %v1842_v44, %s1887_s22 }
 0xfc5   :  { %v1205_v35 = vpop.permute.xlu1 %1204 }
 0xfc6   :  { %v1207_v48 = vmul.f32 %v1205_v35, %v1188_v7  ;;  %v1305_v35 = vsel %vm1024_vm13, %v2624_v46, %v2621_v16 }
 0xfc8   :  { %v1215_v13 = vsel %vm1212_vm9, %v1207_v48, 0.0  ;;  %v2636_v52 = vsel %vm1212_vm9, %v1207_v48, %v2552_v61 }
 0xfc9   :  { %1405 = vrot.lane.b32.xlu1 %v1215_v13, %s1888_s23  ;;  %1334 = vrot.lane.b32.xlu0 %v2636_v52, %s1888_s23 }
 0xff4   :  { %v1301_v21 = vpop.permute.xlu0 %1300 }
 0xff5   :  { %v2645_v10 = vmul.f32 %v1301_v21, %v1284_v63 }
 0xff7   :  { %v2651_v61 = vsel %vm1024_vm13, %v2645_v10, %v2544_v60 }
 0xff8   :  { %1430 = vrot.lane.b32.xlu2 %v2651_v61, %s1888_s23 }
0x103b   :  { %v1406_v17 = vpop.permute.xlu1 %1405  ;;  %v1335_v20 = vpop.permute.xlu0 %1334 }
0x103c   :  { %1716 = vmatmul.msk.f32.vlgmr.msra.gmra.mxu1 %vm63_vm0, %v1335_v20  ;;  %1718 = vmatmul.msk.f32.vlgmr.msra.gmra.mxu2 %vm63_vm0, %v1406_v17 }
0x1052   :  { %v1431_v22 = vpop.permute.xlu2 %1430 }
0x1053   :  { %1719 = vmatmul.msk.f32.vlgmr.msra.gmra.mxu3 %vm63_vm0, %v1431_v22 }
0x10b9   :  { %v1355_v42 = vpop.f32.mrf.mxu1 }
0x10ba   :  { %v1358_v18 = vadd.f32 %v1355_v42, %v127_v26 }
0x10bc   :  { %1843 = vtanh.f32 %v1358_v18  ;;  %v1717_v29 = vmul.f32 -1.442695, %v1358_v18 }
0x10bf   :  { %v1426_v25 = vpop.f32.mrf.mxu2 }
0x10c0   :  { %v1427_v43 = vadd.f32 %v2598_v8, %v1426_v25 }
0x10c2   :  { %v1844_v60 = vpop.eup %1843 }
0x10c3   :  { %1381 = vrot.lane.b32.xlu2 %v1844_v60, %s1887_s22 }
0x10d6   :  { %v1451_v55 = vpop.f32.mrf.mxu3 }
0x10d7   :  { %v1454_v4 = vadd.f32 %v1451_v55, %v1427_v43 }
0x10d9   :  { %1845 = vtanh.f32 %v1454_v4  ;;  %v1720_v62 = vmul.f32 -1.442695, %v1454_v4 }
0x10da   :  { %1847 = vpow2.f32 %v1717_v29 }
0x10df   :  { %v1846_v38 = vpop.eup %1845 }
0x10e0   :  { %1477 = vrot.lane.b32.xlu1 %v1846_v38, %s1887_s22  ;;  %v1848_v24 = vpop.eup %1847 }
0x10e1   :  { %v1362_v2 = vadd.f32 1.0, %v1848_v24 }
0x10e3   :  { %1849 = vrcp.f32 %v1362_v2  ;;  %v1374_v5 = vand.u32 2147483648, %v1362_v2  ;;  %vm1368_vm10 = vweird.f32 %v1362_v2  ;;  %v1372_v6 = vand.u32 2147483647, %v1362_v2 }
0x10e4   :  { %1851 = vpow2.f32 %v1720_v62 }
0x10e5   :  { %v1375_v27 = vor.u32 1.1754944e-38, %v1374_v5  ;;  %vm1373_vm6 = vcmp.eq.f32.partialorder %v1372_v6, 8.507059e+37 }
0x10e9   :  { %v1850_v56 = vpop.eup %1849 }
0x10ea   :  { %v1364_v40 = vmul.f32 %v1850_v56, %v1362_v2  ;;  %vm1369_vm12 = vweird.f32 %v1850_v56  ;;  %v1852_v53 = vpop.eup %1851 }
0x10eb   :  { %vm1370_vm11 = vmor %vm1368_vm10, %vm1369_vm12  ;;  %v1458_v36 = vadd.f32 1.0, %v1852_v53 }
0x10ec   :  { %v1365_v41 = vsub.f32 1.0, %v1364_v40 }
0x10ed   :  { %1853 = vrcp.f32 %v1458_v36  ;;  %v1470_v28 = vand.u32 2147483648, %v1458_v36  ;;  %vm1464_vm15 = vweird.f32 %v1458_v36  ;;  %v1468_v45 = vand.u32 2147483647, %v1458_v36 }
0x10ee   :  { %v1366_v3 = vmul.f32 %v1850_v56, %v1365_v41 }
0x10ef   :  { %v1471_v15 = vor.u32 1.1754944e-38, %v1470_v28  ;;  %vm1469_vm3 = vcmp.eq.f32.partialorder %v1468_v45, 8.507059e+37 }
0x10f0   :  { %v1367_v47 = vadd.f32 %v1850_v56, %v1366_v3 }
0x10f2   :  { %v1371_v51 = vsel %vm1370_vm11, %v1850_v56, %v1367_v47 }
0x10f3   :  { %v1376_v7 = vsel %vm1373_vm6, %v1375_v27, %v1371_v51  ;;  %v1854_v49 = vpop.eup %1853 }
0x10f4   :  { %v1460_v57 = vmul.f32 %v1854_v49, %v1458_v36  ;;  %vm1465_vm14 = vweird.f32 %v1854_v49  ;;  %v1379_v14 = vmul.f32 %v1376_v7, %v2670_v11 }
0x10f5   :  { %vm1466_vm2 = vmor %vm1464_vm15, %vm1465_vm14 }
0x10f6   :  { %v1461_v58 = vsub.f32 1.0, %v1460_v57 }
0x10f8   :  { %v1462_v59 = vmul.f32 %v1854_v49, %v1461_v58 }
0x10fa   :  { %v1463_v19 = vadd.f32 %v1854_v49, %v1462_v59 }
0x10fc   :  { %v1467_v63 = vsel %vm1466_vm2, %v1854_v49, %v1463_v19  ;;  %v1885_v49 = vld [vmem:[%s2767_s9] ss:$0 sm:$0xff] }
0x10fd   :  { %v1472_v31 = vsel %vm1469_vm3, %v1471_v15, %v1467_v63 }
0x10fe   :  { %v1475_v48 = vmul.f32 %v1472_v31, %v1305_v35 }
0x111d   :  { %v1382_v30 = vpop.permute.xlu2 %1381 }
0x111e   :  { %v1384_v37 = vmul.f32 %v1382_v30, %v1376_v7 }
0x1120   :  { %1386 = vrot.lane.b32.xlu1 %v1384_v37, %s1888_s23 }
0x1128   :  { %1398 = vperm.xlu1 %1733, %v1396_v0  }
0x1152   :  { %v1478_v9 = vpop.permute.xlu1 %1477 }
0x1153   :  { %v1480_v23 = vmul.f32 %v1478_v9, %v1472_v31 }
0x1155   :  { %1482 = vrot.lane.b32.xlu0 %v1480_v23, %s1888_s23 }
0x1192   :  { %v1387_v54 = vpop.permute.xlu1 %1386 }
0x1193   :  { %v2673_v32 = vadd.f32 %v1387_v54, %v1379_v14 }
0x1195   :  { %1855 = vtanh.f32 %v2673_v32 }
0x119a   :  { %v2682_v12 = vpop.permute.xlu1 %1398 }
0x119b   :  { %v1856_v44 = vpop.eup %1855  ;;  %vm1400_vm4 = vcmp.eq.s32.totalorder %v2682_v12, 1 }
0x119c   :  { %1392 = vrot.lane.b32.xlu0 %v1856_v44, %s1887_s22  ;;  %v1402_v63 = vsel %vm1400_vm4, %v2673_v32, %v2670_v11 }
0x11c7   :  { %v1483_v13 = vpop.permute.xlu0 %1482 }
0x11c8   :  { %v1485_v39 = vadd.f32 %v1483_v13, %v1475_v48 }
0x11ca   :  { %1857 = vtanh.f32 %v1485_v39  ;;  %v1493_v27 = vsel %vm1212_vm9, %v1485_v39, %v1305_v35 }
0x11d0   :  { %v1858_v1 = vpop.eup %1857 }
0x11d1   :  { %1488 = vrot.lane.b32.xlu2 %v1858_v1, %s1887_s22 }
0x120e   :  { %v1393_v21 = vpop.permute.xlu0 %1392 }
0x120f   :  { %v1395_v17 = vmul.f32 %v1393_v21, %v1376_v7 }
0x1211   :  { %v1403_v20 = vsel %vm1400_vm4, %v1395_v17, 0.0  ;;  %v1401_v55 = vsel %vm1400_vm4, %v1395_v17, %v2636_v52 }
0x1212   :  { %1522 = vrot.lane.b32.xlu0 %v1403_v20, %s1888_s23 }
0x122b   :  { %v1489_v22 = vpop.permute.xlu2 %1488 }
0x122c   :  { %v1491_v16 = vmul.f32 %v1489_v22, %v1472_v31 }
0x122e   :  { %v2691_v46 = vsel %vm1212_vm9, %v1491_v16, %v2651_v61  ;;  %v1306_v61 = vsel %vm1024_vm13, %v2645_v10, 0.0  ;;  %v1494_v53 = vsel %vm1212_vm9, %v1491_v16, 0.0 }
0x122f   :  { %1547 = vrot.lane.b32.xlu2 %v2691_v46, %s1888_s23 }
0x1284   :  { %v1523_v34 = vpop.permute.xlu0 %1522 }
0x1285   :  { %1722 = vmatmul.msk.f32.vlgmr.msrb.gmra.mxu1 %vm63_vm0, %v1523_v34 }
0x1289   :  { %v1548_v26 = vpop.permute.xlu2 %1547 }
0x128a   :  { %1723 = vmatmul.msk.f32.vlgmr.msrb.gmra.mxu2 %vm63_vm0, %v1548_v26 }
0x1302   :  { %v1543_v42 = vpop.f32.mrf.mxu1 }
0x1303   :  { %v1544_v18 = vadd.f32 %v2598_v8, %v1543_v42 }
0x130d   :  { %v1568_v60 = vpop.f32.mrf.mxu2 }
0x130e   :  { %v1571_v25 = vadd.f32 %v1568_v60, %v1544_v18 }
0x1310   :  { %1859 = vtanh.f32 %v1571_v25  ;;  %v1724_v4 = vmul.f32 -1.442695, %v1571_v25 }
0x1312   :  { %1861 = vpow2.f32 %v1724_v4 }
0x1316   :  { %v1860_v43 = vpop.eup %1859 }
0x1317   :  { %1594 = vrot.lane.b32.xlu1 %v1860_v43, %s1887_s22 }
0x1318   :  { %v1862_v8 = vpop.eup %1861 }
0x1319   :  { %v1575_v38 = vadd.f32 1.0, %v1862_v8 }
0x131b   :  { %1863 = vrcp.f32 %v1575_v38  ;;  %v1587_v50 = vand.u32 2147483648, %v1575_v38  ;;  %vm1581_vm13 = vweird.f32 %v1575_v38  ;;  %v1585_v10 = vand.u32 2147483647, %v1575_v38 }
0x131d   :  { %v1588_v3 = vor.u32 1.1754944e-38, %v1587_v50  ;;  %vm1586_vm1 = vcmp.eq.f32.partialorder %v1585_v10, 8.507059e+37 }
0x131f   :  { %1308 = vrot.lane.b32.xlu1 %v1306_v61, %s1888_s23 }
0x1321   :  { %v1864_v29 = vpop.eup %1863 }
0x1322   :  { %v1577_v24 = vmul.f32 %v1864_v29, %v1575_v38  ;;  %vm1582_vm5 = vweird.f32 %v1864_v29 }
0x1323   :  { %vm1583_vm7 = vmor %vm1581_vm13, %vm1582_vm5 }
0x1324   :  { %v1578_v2 = vsub.f32 1.0, %v1577_v24 }
0x1326   :  { %v1579_v56 = vmul.f32 %v1864_v29, %v1578_v2 }
0x1327   :  { %1639 = vrot.lane.b32.xlu1 %v1401_v55, %s1888_s23 }
0x1328   :  { %v1580_v40 = vadd.f32 %v1864_v29, %v1579_v56 }
0x132a   :  { %v1584_v41 = vsel %vm1583_vm7, %v1864_v29, %v1580_v40 }
0x132b   :  { %v1589_v47 = vsel %vm1586_vm1, %v1588_v3, %v1584_v41 }
0x132c   :  { %v1592_v30 = vmul.f32 %v1589_v47, %v1493_v27 }
0x1389   :  { %v1595_v52 = vpop.permute.xlu1 %1594 }
0x138a   :  { %v1597_v5 = vmul.f32 %v1595_v52, %v1589_v47 }
0x138c   :  { %1599 = vrot.lane.b32.xlu2 %v1597_v5, %s1888_s23 }
0x1391   :  { %v1309_v6 = vpop.permute.xlu1 %1308 }
0x1392   :  { %1715 = vmatmul.msk.f32.vlgmr.msrb.gmra.mxu0 %vm63_vm0, %v1309_v6 }
0x1399   :  { %v1640_v51 = vpop.permute.xlu1 %1639 }
0x139a   :  { %1642 = vst.msk [vmem:[%s2769_s11] sm:$0xff] %vm63_vm0, %v1640_v51 }
0x13e6   :  { %v1600_v7 = vpop.permute.xlu2 %1599 }
0x13e7   :  { %v1602_v37 = vadd.f32 %v1600_v7, %v1592_v30 }
0x13e9   :  { %1865 = vtanh.f32 %v1602_v37  ;;  %v1610_v62 = vsel %vm1400_vm4, %v1602_v37, %v1493_v27 }
0x13ea   :  { %1655 = vrot.lane.b32.xlu1 %v1610_v62, %s1890_s20 }
0x13ef   :  { %v1866_v0 = vpop.eup %1865 }
0x13f0   :  { %1605 = vrot.lane.b32.xlu0 %v1866_v0, %s1887_s22 }
0x13f8   :  { %1496 = vrot.lane.b32.xlu0 %v1494_v53, %s1888_s23 }
0x140f   :  { %v1329_v36 = vpop.f32.mrf.mxu0 }
0x1410   :  { %v1330_v57 = vadd.f32 %v1885_v49, %v1329_v36 }
0x1412   :  { %1332 = vst [vmem:[%s2768_s10 + $0x28] sm:$0xff] %v1330_v57 }
0x145c   :  { %v1656_v58 = vpop.permute.xlu1 %1655 }
0x145d   :  { %1727 = vst.msk [vmem:[%s2770_s12 + $0x8] sm:$0xff] %vm63_vm0, %v1656_v58 }
0x1462   :  { %v1606_v33 = vpop.permute.xlu0 %1605 }
0x1463   :  { %v1608_v59 = vmul.f32 %v1606_v33, %v1589_v47 }
0x1465   :  { %v1611_v19 = vsel %vm1400_vm4, %v1608_v59, 0.0  ;;  %v1609_v28 = vsel %vm1400_vm4, %v1608_v59, %v2691_v46 }
0x1466   :  { %1613 = vrot.lane.b32.xlu2 %v1611_v19, %s1888_s23  ;;  %1649 = vrot.lane.b32.xlu0 %v1609_v28, %s1888_s23 }
0x146a   :  { %v1497_v45 = vpop.permute.xlu0 %1496 }
0x146b   :  { %1721 = vmatmul.msk.f32.vlgmr.msra.gmra.mxu0 %vm63_vm0, %v1497_v45 }
0x146e   :  { %1644 = vrot.lane.b32.xlu2 %v1402_v63, %s1890_s20 }
0x14c0   :  { %v1614_v15 = vpop.permute.xlu2 %1613 }
0x14c1   :  { %1725 = vmatmul.msk.f32.vlgmr.msrb.gmra.mxu3 %vm63_vm0, %v1614_v15 }
0x14c8   :  { %v1645_v9 = vpop.permute.xlu2 %1644 }
0x14c9   :  { %1647 = vst.msk [vmem:[%s2770_s12] sm:$0xff] %vm63_vm0, %v1645_v9 }
0x14d8   :  { %v1650_v31 = vpop.permute.xlu0 %1649 }
0x14d9   :  { %1726 = vst.msk [vmem:[%s2769_s11 + $0x8] sm:$0xff] %vm63_vm0, %v1650_v31 }
0x14e8   :  { %v1517_v23 = vpop.f32.mrf.mxu0 }
0x14e9   :  { %v1518_v14 = vadd.f32 %v1885_v49, %v1517_v23 }
0x14eb   :  { %1520 = vst [vmem:[%s2768_s10 + $0x30] sm:$0xff] %v1518_v14 }
0x1544   :  { %v1634_v11 = vpop.f32.mrf.mxu3 }
0x1545   :  { %v1635_v54 = vadd.f32 %v1885_v49, %v1634_v11 }
0x1547   :  { %1637 = vst [vmem:[%s2768_s10 + $0x38] sm:$0xff] %v1635_v54 }

</bundles_post_ra>
